<compile_context>
chip_gen: v7x
topology: tpu7x:2x2x1
jax: 0.10.0
libtpu: 0.0.40
codegen_flags: <defaults>
</compile_context>

<pallas_src>
import functools

import jax
import jax.numpy as jnp
import numpy as np
from jax import lax
from jax.experimental import pallas as pl
from jax.experimental.pallas import tpu as pltpu

# Tap order (dy outer, dx inner) — must match the (O, ky, kx, I) weight flatten.
_TAP_OFFSETS = tuple((dy, dx) for dy in (-1, 0, 1) for dx in (-1, 0, 1))


# --------------------------- hardware-aware config ---------------------------
_VMEM_LIMIT = None
_USE_XLU_ROLL = None


def _vmem_limit_bytes():
    """Per-generation scoped-VMEM limit: ~48 MiB on v7x, ~96 MiB on v5e/v6e."""
    global _VMEM_LIMIT
    if _VMEM_LIMIT is None:
        try:
            cap = int(pltpu.get_tpu_info().vmem_capacity_bytes)
        except Exception:
            cap = 64 * 1024 * 1024          # conservative: v7x has 64 MiB per TC
        _VMEM_LIMIT = int(max(min(cap - (16 << 20), 96 << 20), 16 << 20))
    return _VMEM_LIMIT


def _resolve_roll_impl():
    """Probe pltpu.roll (XLU lane rotate) once; fall back to jnp.roll."""
    global _USE_XLU_ROLL
    if _USE_XLU_ROLL is None:
        def probe(x_ref, o_ref):
            o_ref[...] = pltpu.roll(x_ref[...], 5, axis=1)
        try:
            x = jnp.arange(8 * 256, dtype=jnp.float32).reshape(8, 256)
            got = pl.pallas_call(
                probe, out_shape=jax.ShapeDtypeStruct((8, 256), jnp.float32))(x)
            _USE_XLU_ROLL = bool(jnp.all(got == jnp.roll(x, 5, axis=1)))
        except Exception:
            _USE_XLU_ROLL = False
    return _USE_XLU_ROLL


def _pick_batch_tile(N, C, HWp, cdt_bytes, budget):
    """Largest per-step batch tile B (dividing N) whose working set fits the
    VMEM budget, keeping >= 2 grid steps when possible (core sharding)."""
    def est(b):
        lanes = b * HWp
        act_blk = C * lanes * 4                       # one f32 (C, B*HWp) block
        weights = 2 * C * 9 * C * cdt_bytes
        scratch = 9 * C * lanes * cdt_bytes
        live_f32 = 4 * act_blk                        # a1 / h1 / a2 / epilogue temps
        # x and o blocks are double-buffered by the BlockSpec pipeline.
        return 4 * act_blk + 2 * weights + scratch + live_f32
    best = 1
    for d in range(1, N + 1):
        if N % d or (d == N and N > 1):               # keep >= 2 grid steps
            continue
        if d * HWp <= 32768 and est(d) <= budget:
            best = max(best, d)
    return best


# --------------------------------- kernel ------------------------------------
def basic_block_kernel(x_ref, m_ref, w1_ref, w2_ref, b1_ref, b2_ref,
                       o_ref, col_ref, *, B, HWp, W, use_xlu_roll):
    """One group of B images per grid step.

    x_ref  : (B, C, HWp)   f32  inputs, channel-major, spatial flattened+padded
    m_ref  : (8, HWp)      f32  0/1 validity of the 8 non-center taps
    w1_ref : (C, 9*C)      cdt  conv1 weights (BN1 scale folded), taps in K dim
    w2_ref : (C, 9*C)      cdt  conv2 weights (BN2 scale folded)
    b1_ref : (C, 1)        f32  folded BN1 bias
    b2_ref : (C, 1)        f32  folded BN2 bias
    o_ref  : (B, C, HWp)   f32  output (lane-dense: HWp multiple of 128)
    col_ref: (9*C, B*HWp)  cdt  shared im2col scratch (reused by both convs)
    """
    cdt = w1_ref.dtype
    C = w1_ref.shape[0]
    masks = m_ref[...]                       # (8, HWp) f32 — loaded once, reused

    def lane_roll(img, shift):
        amt = (-shift) % HWp                 # static, non-negative lane rotate
        if use_xlu_roll:
            return pltpu.roll(img, amt, axis=1)
        return jnp.roll(img, amt, axis=1)

    def fill_cols(img_f32, b):
        # Scatter the 9 shifted+masked taps of image b into its lane band of
        # the shared scratch; cast to the MXU dtype at the store.
        m = 0
        for t, (dy, dx) in enumerate(_TAP_OFFSETS):
            rows = pl.ds(t * C, C)
            cols = pl.ds(b * HWp, HWp)
            if dy == 0 and dx == 0:
                col_ref[rows, cols] = img_f32.astype(cdt)
            else:
                tap = lane_roll(img_f32, dy * W + dx) * masks[m:m + 1, :]
                col_ref[rows, cols] = tap.astype(cdt)
                m += 1

    # ---- conv1 (one K=9C MXU matmul over all B images) -> +bias -> relu ----
    for b in range(B):
        fill_cols(x_ref[b], b)
    a1 = jnp.dot(w1_ref[...], col_ref[...], preferred_element_type=jnp.float32)
    h1 = jnp.maximum(a1 + b1_ref[...], 0.0)           # (C, B*HWp) f32

    # ---- conv2 -> +bias -> +identity -> relu ----
    for b in range(B):
        fill_cols(h1[:, b * HWp:(b + 1) * HWp], b)
    a2 = jnp.dot(w2_ref[...], col_ref[...], preferred_element_type=jnp.float32)
    for b in range(B):
        res = a2[:, b * HWp:(b + 1) * HWp] + b2_ref[...] + x_ref[b]
        o_ref[b] = jnp.maximum(res, 0.0).astype(o_ref.dtype)


# -------------------------------- wrapper -------------------------------------
def _fold_bn(gamma, beta, mean, var, eps):
    scale = gamma * lax.rsqrt(var + eps)
    bias = beta - mean * scale
    return scale.astype(jnp.float32), bias.astype(jnp.float32)


@functools.partial(jax.jit, static_argnames=("compute_dtype", "eps",
                                              "use_xlu_roll", "vmem_limit_bytes"))
def _basic_block_forward(x_nchw, params, *, compute_dtype, eps,
                         use_xlu_roll, vmem_limit_bytes):
    N, Cin, H, W = x_nchw.shape
    Cout = params["w1"].shape[0]
    if Cin != Cout:
        raise NotImplementedError("downsample / channel-change shortcut not supported")
    C = Cout
    HW = H * W
    HWp = ((HW + 127) // 128) * 128          # lane-align the flattened spatial axis

    cdt_bytes = np.dtype(compute_dtype).itemsize
    B = _pick_batch_tile(N, C, HWp, cdt_bytes, budget=(3 * vmem_limit_bytes) // 4)

    # Free reshape: NCHW -> (N, C, H*W); spatial goes to the lane dim (+ padding).
    x = x_nchw.astype(jnp.float32).reshape(N, C, HW)
    if HWp != HW:
        x = jnp.pad(x, ((0, 0), (0, 0), (0, HWp - HW)))

    # Fold eval-mode BN: scale into the conv weights, bias stays in the epilogue.
    s1, b1 = _fold_bn(params["bn1_gamma"], params["bn1_beta"],
                      params["bn1_mean"], params["bn1_var"], eps)
    s2, b2 = _fold_bn(params["bn2_gamma"], params["bn2_beta"],
                      params["bn2_mean"], params["bn2_var"], eps)
    w1 = params["w1"].astype(jnp.float32) * s1.reshape(-1, 1, 1, 1)
    w2 = params["w2"].astype(jnp.float32) * s2.reshape(-1, 1, 1, 1)
    # PyTorch OIHW -> (O, ky, kx, I) -> (O, 9*I); tap order matches _TAP_OFFSETS.
    w1 = jnp.transpose(w1, (0, 2, 3, 1)).reshape(C, 9 * C).astype(compute_dtype)
    w2 = jnp.transpose(w2, (0, 2, 3, 1)).reshape(C, 9 * C).astype(compute_dtype)
    b1 = b1.reshape(C, 1)
    b2 = b2.reshape(C, 1)

    # Precomputed boundary masks for the 8 non-center taps (host-side constants).
    pos = np.arange(HWp, dtype=np.int64)
    r, c = pos // W, pos % W
    inside = pos < HW
    rows = []
    for dy, dx in _TAP_OFFSETS:
        if dy == 0 and dx == 0:
            continue
        rows.append(inside & (r + dy >= 0) & (r + dy < H) & (c + dx >= 0) & (c + dx < W))
    masks = jnp.asarray(np.stack(rows).astype(np.float32))          # (8, HWp)

    out = pl.pallas_call(
        functools.partial(basic_block_kernel, B=B, HWp=HWp, W=W,
                          use_xlu_roll=use_xlu_roll),
        out_shape=jax.ShapeDtypeStruct((N, C, HWp), jnp.float32),
        grid=(N // B,),
        in_specs=[
            pl.BlockSpec((B, C, HWp), lambda n: (n, 0, 0)),      # x, B images / step
            pl.BlockSpec((8, HWp), lambda n: (0, 0)),            # tap validity masks
            pl.BlockSpec((C, 9 * C), lambda n: (0, 0)),          # w1 (resident)
            pl.BlockSpec((C, 9 * C), lambda n: (0, 0)),          # w2 (resident)
            pl.BlockSpec((C, 1), lambda n: (0, 0)),              # bn1 bias
            pl.BlockSpec((C, 1), lambda n: (0, 0)),              # bn2 bias
        ],
        out_specs=pl.BlockSpec((B, C, HWp), lambda n: (n, 0, 0)),
        scratch_shapes=[pltpu.VMEM((9 * C, B * HWp), compute_dtype)],
        compiler_params=pltpu.CompilerParams(
            dimension_semantics=("parallel",),
            vmem_limit_bytes=int(vmem_limit_bytes),
        ),
    )(x, masks, w1, w2, b1, b2)

    out = out[:, :, :HW]
    return out.reshape(N, C, H, W)           # already NCHW — no transpose needed


def basic_block_forward(x_nchw, params, *, compute_dtype=jnp.bfloat16, eps=1e-5):
    """BasicBlock forward. Input/output are NCHW f32, matching the PyTorch module."""
    return _basic_block_forward(
        x_nchw, params, compute_dtype=compute_dtype, eps=float(eps),
        use_xlu_roll=_resolve_roll_impl(), vmem_limit_bytes=_vmem_limit_bytes())


# ------------------------- pure-JAX reference -------------------------
def basic_block_reference(x_nchw, params, eps=1e-5):
    dn = ("NCHW", "OIHW", "NCHW")

    def conv(x, w):
        return lax.conv_general_dilated(x, w, window_strides=(1, 1),
                                        padding=((1, 1), (1, 1)),
                                        dimension_numbers=dn)

    def bn(x, g, b, m, v):
        g = g.reshape(1, -1, 1, 1); b = b.reshape(1, -1, 1, 1)
        m = m.reshape(1, -1, 1, 1); v = v.reshape(1, -1, 1, 1)
        return (x - m) * lax.rsqrt(v + eps) * g + b

    out = conv(x_nchw, params["w1"])
    out = jax.nn.relu(bn(out, params["bn1_gamma"], params["bn1_beta"],
                         params["bn1_mean"], params["bn1_var"]))
    out = conv(out, params["w2"])
    out = bn(out, params["bn2_gamma"], params["bn2_beta"],
             params["bn2_mean"], params["bn2_var"])
    return jax.nn.relu(out + x_nchw)


if __name__ == "__main__":
    def make_params(key, C):
        ks = jax.random.split(key, 10)
        return {
            "w1": 0.1 * jax.random.normal(ks[0], (C, C, 3, 3), jnp.float32),
            "w2": 0.1 * jax.random.normal(ks[1], (C, C, 3, 3), jnp.float32),
            "bn1_gamma": jax.random.uniform(ks[2], (C,), jnp.float32, 0.5, 1.5),
            "bn1_beta": 0.1 * jax.random.normal(ks[3], (C,), jnp.float32),
            "bn1_mean": 0.1 * jax.random.normal(ks[4], (C,), jnp.float32),
            "bn1_var": jax.random.uniform(ks[5], (C,), jnp.float32, 0.5, 1.5),
            "bn2_gamma": jax.random.uniform(ks[6], (C,), jnp.float32, 0.5, 1.5),
            "bn2_beta": 0.1 * jax.random.normal(ks[7], (C,), jnp.float32),
            "bn2_mean": 0.1 * jax.random.normal(ks[8], (C,), jnp.float32),
            "bn2_var": jax.random.uniform(ks[9], (C,), jnp.float32, 0.5, 1.5),
        }

    key = jax.random.PRNGKey(0)
    k_x1, k_p1, k_x2, k_p2 = jax.random.split(key, 4)

    # Case 1: lane-aligned spatial (16x16); N=4 -> B=2 images per grid step.
    N, C, H, W = 4, 8, 16, 16
    x = jax.random.normal(k_x1, (N, C, H, W), jnp.float32)
    params = make_params(k_p1, C)
    ref = jax.block_until_ready(basic_block_reference(x, params))

    out_f32 = jax.block_until_ready(
        basic_block_forward(x, params, compute_dtype=jnp.float32))
    np.testing.assert_allclose(np.asarray(out_f32), np.asarray(ref),
                               rtol=2e-3, atol=2e-3)

    out_bf16 = jax.block_until_ready(basic_block_forward(x, params))
    np.testing.assert_allclose(np.asarray(out_bf16), np.asarray(ref),
                               rtol=3e-2, atol=3e-2)

    # Case 2: non-lane-aligned spatial (14x14 -> padded to 256 lanes).
    N2, C2, H2, W2 = 4, 8, 14, 14
    x2 = jax.random.normal(k_x2, (N2, C2, H2, W2), jnp.float32)
    params2 = make_params(k_p2, C2)
    ref2 = jax.block_until_ready(basic_block_reference(x2, params2))
    out2 = jax.block_until_ready(
        basic_block_forward(x2, params2, compute_dtype=jnp.float32))
    np.testing.assert_allclose(np.asarray(out2), np.asarray(ref2),
                               rtol=2e-3, atol=2e-3)

    print("KERNEL_OK")
</pallas_src>

<mosaic_0001>
module attributes {stable_mosaic.version = 11 : i64} {
  func.func @probe(%arg0: memref<8x256xf32, #tpu.memory_space<vmem>>, %arg1: memref<8x256xf32, #tpu.memory_space<vmem>>) attributes {dimension_semantics = [], scalar_prefetch = 0 : i64, scratch_operands = 0 : i64, tpu.core_type = #tpu.core_type<tc>} {
    %c0 = arith.constant 0 : index
    %c0_0 = arith.constant 0 : index
    %0 = vector.load %arg0[%c0, %c0_0] : memref<8x256xf32, #tpu.memory_space<vmem>>, vector<8x256xf32>
    %c5_i32 = arith.constant 5 : i32
    %1 = tpu.dynamic_rotate %0 by %c5_i32 dim 1 : vector<8x256xf32>, i32 -> vector<8x256xf32>
    %c0_1 = arith.constant 0 : index
    %c0_2 = arith.constant 0 : index
    %2 = vector.load %arg1[%c0_1, %c0_2] : memref<8x256xf32, #tpu.memory_space<vmem>>, vector<8x256xf32>
    tpu.vector_store %arg1[%c0_1, %c0_2], %1 {strides = array<i32>} : memref<8x256xf32, #tpu.memory_space<vmem>>, vector<8x256xf32>,
    return
  }
}

module attributes {stable_mosaic.version = 11 : i64} {
  func.func @basic_block_kernel(%arg0: i32, %arg1: memref<2x8x256xf32, #tpu.memory_space<vmem>>, %arg2: memref<8x256xf32, #tpu.memory_space<vmem>>, %arg3: memref<8x72xf32, #tpu.memory_space<vmem>>, %arg4: memref<8x72xf32, #tpu.memory_space<vmem>>, %arg5: memref<8x1xf32, #tpu.memory_space<vmem>>, %arg6: memref<8x1xf32, #tpu.memory_space<vmem>>, %arg7: memref<2x8x256xf32, #tpu.memory_space<vmem>>, %arg8: memref<72x512xf32, #tpu.memory_space<vmem>>) attributes {dimension_semantics = [#tpu.dimension_semantics<parallel>], iteration_bounds = array<i64: 2>, scalar_prefetch = 0 : i64, scratch_operands = 1 : i64, tpu.core_type = #tpu.core_type<tc>, window_params = [{transform_indices = @transform_0, window_bounds = array<i64: 2, 8, 256>}, {pipeline_mode = #tpu.pipeline_mode<synchronous>, transform_indices = @transform_1, window_bounds = array<i64: 8, 256>}, {pipeline_mode = #tpu.pipeline_mode<synchronous>, transform_indices = @transform_2, window_bounds = array<i64: 8, 72>}, {pipeline_mode = #tpu.pipeline_mode<synchronous>, transform_indices = @transform_3, window_bounds = array<i64: 8, 72>}, {pipeline_mode = #tpu.pipeline_mode<synchronous>, transform_indices = @transform_4, window_bounds = array<i64: 8, 1>}, {pipeline_mode = #tpu.pipeline_mode<synchronous>, transform_indices = @transform_5, window_bounds = array<i64: 8, 1>}, {transform_indices = @transform_6, window_bounds = array<i64: 2, 8, 256>}]} {
    %c0 = arith.constant 0 : index
    %c0_0 = arith.constant 0 : index
    %0 = vector.load %arg2[%c0, %c0_0] : memref<8x256xf32, #tpu.memory_space<vmem>>, vector<8x256xf32>
    %c0_1 = arith.constant 0 : index
    %c0_2 = arith.constant 0 : index
    %c0_3 = arith.constant 0 : index
    %1 = vector.load %arg1[%c0_1, %c0_2, %c0_3] : memref<2x8x256xf32, #tpu.memory_space<vmem>>, vector<1x8x256xf32>
    %2 = vector.shape_cast %1 : vector<1x8x256xf32> to vector<8x256xf32>
    %3 = vector.extract_strided_slice %2 {offsets = [0, 239], sizes = [8, 17], strides = [1, 1]} : vector<8x256xf32> to vector<8x17xf32>
    %4 = vector.extract_strided_slice %2 {offsets = [0, 0], sizes = [8, 239], strides = [1, 1]} : vector<8x256xf32> to vector<8x239xf32>
    %5 = tpu.concatenate %3, %4 in 1 : vector<8x17xf32>, vector<8x239xf32> -> vector<8x256xf32>
    %6 = vector.extract_strided_slice %0 {offsets = [0, 0], sizes = [1, 256], strides = [1, 1]} : vector<8x256xf32> to vector<1x256xf32>
    %7 = vector.broadcast %6 : vector<1x256xf32> to vector<8x256xf32>
    %8 = arith.mulf %5, %7 : vector<8x256xf32>
    %c0_4 = arith.constant 0 : index
    %c0_5 = arith.constant 0 : index
    %9 = vector.load %arg8[%c0_4, %c0_5] : memref<72x512xf32, #tpu.memory_space<vmem>>, vector<8x256xf32>
    tpu.vector_store %arg8[%c0_4, %c0_5], %8 {strides = array<i32>} : memref<72x512xf32, #tpu.memory_space<vmem>>, vector<8x256xf32>,
    %10 = vector.extract_strided_slice %2 {offsets = [0, 240], sizes = [8, 16], strides = [1, 1]} : vector<8x256xf32> to vector<8x16xf32>
    %11 = vector.extract_strided_slice %2 {offsets = [0, 0], sizes = [8, 240], strides = [1, 1]} : vector<8x256xf32> to vector<8x240xf32>
    %12 = tpu.concatenate %10, %11 in 1 : vector<8x16xf32>, vector<8x240xf32> -> vector<8x256xf32>
    %13 = vector.extract_strided_slice %0 {offsets = [1, 0], sizes = [1, 256], strides = [1, 1]} : vector<8x256xf32> to vector<1x256xf32>
    %14 = vector.broadcast %13 : vector<1x256xf32> to vector<8x256xf32>
    %15 = arith.mulf %12, %14 : vector<8x256xf32>
    %c8 = arith.constant 8 : index
    %c0_6 = arith.constant 0 : index
    %16 = vector.load %arg8[%c8, %c0_6] : memref<72x512xf32, #tpu.memory_space<vmem>>, vector<8x256xf32>
    tpu.vector_store %arg8[%c8, %c0_6], %15 {strides = array<i32>} : memref<72x512xf32, #tpu.memory_space<vmem>>, vector<8x256xf32>,
    %17 = vector.extract_strided_slice %2 {offsets = [0, 241], sizes = [8, 15], strides = [1, 1]} : vector<8x256xf32> to vector<8x15xf32>
    %18 = vector.extract_strided_slice %2 {offsets = [0, 0], sizes = [8, 241], strides = [1, 1]} : vector<8x256xf32> to vector<8x241xf32>
    %19 = tpu.concatenate %17, %18 in 1 : vector<8x15xf32>, vector<8x241xf32> -> vector<8x256xf32>
    %20 = vector.extract_strided_slice %0 {offsets = [2, 0], sizes = [1, 256], strides = [1, 1]} : vector<8x256xf32> to vector<1x256xf32>
    %21 = vector.broadcast %20 : vector<1x256xf32> to vector<8x256xf32>
    %22 = arith.mulf %19, %21 : vector<8x256xf32>
    %c16 = arith.constant 16 : index
    %c0_7 = arith.constant 0 : index
    %23 = vector.load %arg8[%c16, %c0_7] : memref<72x512xf32, #tpu.memory_space<vmem>>, vector<8x256xf32>
    tpu.vector_store %arg8[%c16, %c0_7], %22 {strides = array<i32>} : memref<72x512xf32, #tpu.memory_space<vmem>>, vector<8x256xf32>,
    %24 = vector.extract_strided_slice %2 {offsets = [0, 255], sizes = [8, 1], strides = [1, 1]} : vector<8x256xf32> to vector<8x1xf32>
    %25 = vector.extract_strided_slice %2 {offsets = [0, 0], sizes = [8, 255], strides = [1, 1]} : vector<8x256xf32> to vector<8x255xf32>
    %26 = tpu.concatenate %24, %25 in 1 : vector<8x1xf32>, vector<8x255xf32> -> vector<8x256xf32>
    %27 = vector.extract_strided_slice %0 {offsets = [3, 0], sizes = [1, 256], strides = [1, 1]} : vector<8x256xf32> to vector<1x256xf32>
    %28 = vector.broadcast %27 : vector<1x256xf32> to vector<8x256xf32>
    %29 = arith.mulf %26, %28 : vector<8x256xf32>
    %c24 = arith.constant 24 : index
    %c0_8 = arith.constant 0 : index
    %30 = vector.load %arg8[%c24, %c0_8] : memref<72x512xf32, #tpu.memory_space<vmem>>, vector<8x256xf32>
    tpu.vector_store %arg8[%c24, %c0_8], %29 {strides = array<i32>} : memref<72x512xf32, #tpu.memory_space<vmem>>, vector<8x256xf32>,
    %c32 = arith.constant 32 : index
    %c0_9 = arith.constant 0 : index
    %31 = vector.load %arg8[%c32, %c0_9] : memref<72x512xf32, #tpu.memory_space<vmem>>, vector<8x256xf32>
    tpu.vector_store %arg8[%c32, %c0_9], %2 {strides = array<i32>} : memref<72x512xf32, #tpu.memory_space<vmem>>, vector<8x256xf32>,
    %32 = vector.extract_strided_slice %2 {offsets = [0, 1], sizes = [8, 255], strides = [1, 1]} : vector<8x256xf32> to vector<8x255xf32>
    %33 = vector.extract_strided_slice %2 {offsets = [0, 0], sizes = [8, 1], strides = [1, 1]} : vector<8x256xf32> to vector<8x1xf32>
    %34 = tpu.concatenate %32, %33 in 1 : vector<8x255xf32>, vector<8x1xf32> -> vector<8x256xf32>
    %35 = vector.extract_strided_slice %0 {offsets = [4, 0], sizes = [1, 256], strides = [1, 1]} : vector<8x256xf32> to vector<1x256xf32>
    %36 = vector.broadcast %35 : vector<1x256xf32> to vector<8x256xf32>
    %37 = arith.mulf %34, %36 : vector<8x256xf32>
    %c40 = arith.constant 40 : index
    %c0_10 = arith.constant 0 : index
    %38 = vector.load %arg8[%c40, %c0_10] : memref<72x512xf32, #tpu.memory_space<vmem>>, vector<8x256xf32>
    tpu.vector_store %arg8[%c40, %c0_10], %37 {strides = array<i32>} : memref<72x512xf32, #tpu.memory_space<vmem>>, vector<8x256xf32>,
    %39 = vector.extract_strided_slice %2 {offsets = [0, 15], sizes = [8, 241], strides = [1, 1]} : vector<8x256xf32> to vector<8x241xf32>
    %40 = vector.extract_strided_slice %2 {offsets = [0, 0], sizes = [8, 15], strides = [1, 1]} : vector<8x256xf32> to vector<8x15xf32>
    %41 = tpu.concatenate %39, %40 in 1 : vector<8x241xf32>, vector<8x15xf32> -> vector<8x256xf32>
    %42 = vector.extract_strided_slice %0 {offsets = [5, 0], sizes = [1, 256], strides = [1, 1]} : vector<8x256xf32> to vector<1x256xf32>
    %43 = vector.broadcast %42 : vector<1x256xf32> to vector<8x256xf32>
    %44 = arith.mulf %41, %43 : vector<8x256xf32>
    %c48 = arith.constant 48 : index
    %c0_11 = arith.constant 0 : index
    %45 = vector.load %arg8[%c48, %c0_11] : memref<72x512xf32, #tpu.memory_space<vmem>>, vector<8x256xf32>
    tpu.vector_store %arg8[%c48, %c0_11], %44 {strides = array<i32>} : memref<72x512xf32, #tpu.memory_space<vmem>>, vector<8x256xf32>,
    %46 = vector.extract_strided_slice %2 {offsets = [0, 16], sizes = [8, 240], strides = [1, 1]} : vector<8x256xf32> to vector<8x240xf32>
    %47 = vector.extract_strided_slice %2 {offsets = [0, 0], sizes = [8, 16], strides = [1, 1]} : vector<8x256xf32> to vector<8x16xf32>
    %48 = tpu.concatenate %46, %47 in 1 : vector<8x240xf32>, vector<8x16xf32> -> vector<8x256xf32>
    %49 = vector.extract_strided_slice %0 {offsets = [6, 0], sizes = [1, 256], strides = [1, 1]} : vector<8x256xf32> to vector<1x256xf32>
    %50 = vector.broadcast %49 : vector<1x256xf32> to vector<8x256xf32>
    %51 = arith.mulf %48, %50 : vector<8x256xf32>
    %c56 = arith.constant 56 : index
    %c0_12 = arith.constant 0 : index
    %52 = vector.load %arg8[%c56, %c0_12] : memref<72x512xf32, #tpu.memory_space<vmem>>, vector<8x256xf32>
    tpu.vector_store %arg8[%c56, %c0_12], %51 {strides = array<i32>} : memref<72x512xf32, #tpu.memory_space<vmem>>, vector<8x256xf32>,
    %53 = vector.extract_strided_slice %2 {offsets = [0, 17], sizes = [8, 239], strides = [1, 1]} : vector<8x256xf32> to vector<8x239xf32>
    %54 = vector.extract_strided_slice %2 {offsets = [0, 0], sizes = [8, 17], strides = [1, 1]} : vector<8x256xf32> to vector<8x17xf32>
    %55 = tpu.concatenate %53, %54 in 1 : vector<8x239xf32>, vector<8x17xf32> -> vector<8x256xf32>
    %56 = vector.extract_strided_slice %0 {offsets = [7, 0], sizes = [1, 256], strides = [1, 1]} : vector<8x256xf32> to vector<1x256xf32>
    %57 = vector.broadcast %56 : vector<1x256xf32> to vector<8x256xf32>
    %58 = arith.mulf %55, %57 : vector<8x256xf32>
    %c64 = arith.constant 64 : index
    %c0_13 = arith.constant 0 : index
    %59 = vector.load %arg8[%c64, %c0_13] : memref<72x512xf32, #tpu.memory_space<vmem>>, vector<8x256xf32>
    tpu.vector_store %arg8[%c64, %c0_13], %58 {strides = array<i32>} : memref<72x512xf32, #tpu.memory_space<vmem>>, vector<8x256xf32>,
    %c1 = arith.constant 1 : index
    %c0_14 = arith.constant 0 : index
    %c0_15 = arith.constant 0 : index
    %60 = vector.load %arg1[%c1, %c0_14, %c0_15] : memref<2x8x256xf32, #tpu.memory_space<vmem>>, vector<1x8x256xf32>
    %61 = vector.shape_cast %60 : vector<1x8x256xf32> to vector<8x256xf32>
    %62 = vector.extract_strided_slice %61 {offsets = [0, 239], sizes = [8, 17], strides = [1, 1]} : vector<8x256xf32> to vector<8x17xf32>
    %63 = vector.extract_strided_slice %61 {offsets = [0, 0], sizes = [8, 239], strides = [1, 1]} : vector<8x256xf32> to vector<8x239xf32>
    %64 = tpu.concatenate %62, %63 in 1 : vector<8x17xf32>, vector<8x239xf32> -> vector<8x256xf32>
    %65 = vector.extract_strided_slice %0 {offsets = [0, 0], sizes = [1, 256], strides = [1, 1]} : vector<8x256xf32> to vector<1x256xf32>
    %66 = vector.broadcast %65 : vector<1x256xf32> to vector<8x256xf32>
    %67 = arith.mulf %64, %66 : vector<8x256xf32>
    %c0_16 = arith.constant 0 : index
    %c256 = arith.constant 256 : index
    %68 = vector.load %arg8[%c0_16, %c256] : memref<72x512xf32, #tpu.memory_space<vmem>>, vector<8x256xf32>
    tpu.vector_store %arg8[%c0_16, %c256], %67 {strides = array<i32>} : memref<72x512xf32, #tpu.memory_space<vmem>>, vector<8x256xf32>,
    %69 = vector.extract_strided_slice %61 {offsets = [0, 240], sizes = [8, 16], strides = [1, 1]} : vector<8x256xf32> to vector<8x16xf32>
    %70 = vector.extract_strided_slice %61 {offsets = [0, 0], sizes = [8, 240], strides = [1, 1]} : vector<8x256xf32> to vector<8x240xf32>
    %71 = tpu.concatenate %69, %70 in 1 : vector<8x16xf32>, vector<8x240xf32> -> vector<8x256xf32>
    %72 = vector.extract_strided_slice %0 {offsets = [1, 0], sizes = [1, 256], strides = [1, 1]} : vector<8x256xf32> to vector<1x256xf32>
    %73 = vector.broadcast %72 : vector<1x256xf32> to vector<8x256xf32>
    %74 = arith.mulf %71, %73 : vector<8x256xf32>
    %c8_17 = arith.constant 8 : index
    %c256_18 = arith.constant 256 : index
    %75 = vector.load %arg8[%c8_17, %c256_18] : memref<72x512xf32, #tpu.memory_space<vmem>>, vector<8x256xf32>
    tpu.vector_store %arg8[%c8_17, %c256_18], %74 {strides = array<i32>} : memref<72x512xf32, #tpu.memory_space<vmem>>, vector<8x256xf32>,
    %76 = vector.extract_strided_slice %61 {offsets = [0, 241], sizes = [8, 15], strides = [1, 1]} : vector<8x256xf32> to vector<8x15xf32>
    %77 = vector.extract_strided_slice %61 {offsets = [0, 0], sizes = [8, 241], strides = [1, 1]} : vector<8x256xf32> to vector<8x241xf32>
    %78 = tpu.concatenate %76, %77 in 1 : vector<8x15xf32>, vector<8x241xf32> -> vector<8x256xf32>
    %79 = vector.extract_strided_slice %0 {offsets = [2, 0], sizes = [1, 256], strides = [1, 1]} : vector<8x256xf32> to vector<1x256xf32>
    %80 = vector.broadcast %79 : vector<1x256xf32> to vector<8x256xf32>
    %81 = arith.mulf %78, %80 : vector<8x256xf32>
    %c16_19 = arith.constant 16 : index
    %c256_20 = arith.constant 256 : index
    %82 = vector.load %arg8[%c16_19, %c256_20] : memref<72x512xf32, #tpu.memory_space<vmem>>, vector<8x256xf32>
    tpu.vector_store %arg8[%c16_19, %c256_20], %81 {strides = array<i32>} : memref<72x512xf32, #tpu.memory_space<vmem>>, vector<8x256xf32>,
    %83 = vector.extract_strided_slice %61 {offsets = [0, 255], sizes = [8, 1], strides = [1, 1]} : vector<8x256xf32> to vector<8x1xf32>
    %84 = vector.extract_strided_slice %61 {offsets = [0, 0], sizes = [8, 255], strides = [1, 1]} : vector<8x256xf32> to vector<8x255xf32>
    %85 = tpu.concatenate %83, %84 in 1 : vector<8x1xf32>, vector<8x255xf32> -> vector<8x256xf32>
    %86 = vector.extract_strided_slice %0 {offsets = [3, 0], sizes = [1, 256], strides = [1, 1]} : vector<8x256xf32> to vector<1x256xf32>
    %87 = vector.broadcast %86 : vector<1x256xf32> to vector<8x256xf32>
    %88 = arith.mulf %85, %87 : vector<8x256xf32>
    %c24_21 = arith.constant 24 : index
    %c256_22 = arith.constant 256 : index
    %89 = vector.load %arg8[%c24_21, %c256_22] : memref<72x512xf32, #tpu.memory_space<vmem>>, vector<8x256xf32>
    tpu.vector_store %arg8[%c24_21, %c256_22], %88 {strides = array<i32>} : memref<72x512xf32, #tpu.memory_space<vmem>>, vector<8x256xf32>,
    %c32_23 = arith.constant 32 : index
    %c256_24 = arith.constant 256 : index
    %90 = vector.load %arg8[%c32_23, %c256_24] : memref<72x512xf32, #tpu.memory_space<vmem>>, vector<8x256xf32>
    tpu.vector_store %arg8[%c32_23, %c256_24], %61 {strides = array<i32>} : memref<72x512xf32, #tpu.memory_space<vmem>>, vector<8x256xf32>,
    %91 = vector.extract_strided_slice %61 {offsets = [0, 1], sizes = [8, 255], strides = [1, 1]} : vector<8x256xf32> to vector<8x255xf32>
    %92 = vector.extract_strided_slice %61 {offsets = [0, 0], sizes = [8, 1], strides = [1, 1]} : vector<8x256xf32> to vector<8x1xf32>
    %93 = tpu.concatenate %91, %92 in 1 : vector<8x255xf32>, vector<8x1xf32> -> vector<8x256xf32>
    %94 = vector.extract_strided_slice %0 {offsets = [4, 0], sizes = [1, 256], strides = [1, 1]} : vector<8x256xf32> to vector<1x256xf32>
    %95 = vector.broadcast %94 : vector<1x256xf32> to vector<8x256xf32>
    %96 = arith.mulf %93, %95 : vector<8x256xf32>
    %c40_25 = arith.constant 40 : index
    %c256_26 = arith.constant 256 : index
    %97 = vector.load %arg8[%c40_25, %c256_26] : memref<72x512xf32, #tpu.memory_space<vmem>>, vector<8x256xf32>
    tpu.vector_store %arg8[%c40_25, %c256_26], %96 {strides = array<i32>} : memref<72x512xf32, #tpu.memory_space<vmem>>, vector<8x256xf32>,
    %98 = vector.extract_strided_slice %61 {offsets = [0, 15], sizes = [8, 241], strides = [1, 1]} : vector<8x256xf32> to vector<8x241xf32>
    %99 = vector.extract_strided_slice %61 {offsets = [0, 0], sizes = [8, 15], strides = [1, 1]} : vector<8x256xf32> to vector<8x15xf32>
    %100 = tpu.concatenate %98, %99 in 1 : vector<8x241xf32>, vector<8x15xf32> -> vector<8x256xf32>
    %101 = vector.extract_strided_slice %0 {offsets = [5, 0], sizes = [1, 256], strides = [1, 1]} : vector<8x256xf32> to vector<1x256xf32>
    %102 = vector.broadcast %101 : vector<1x256xf32> to vector<8x256xf32>
    %103 = arith.mulf %100, %102 : vector<8x256xf32>
    %c48_27 = arith.constant 48 : index
    %c256_28 = arith.constant 256 : index
    %104 = vector.load %arg8[%c48_27, %c256_28] : memref<72x512xf32, #tpu.memory_space<vmem>>, vector<8x256xf32>
    tpu.vector_store %arg8[%c48_27, %c256_28], %103 {strides = array<i32>} : memref<72x512xf32, #tpu.memory_space<vmem>>, vector<8x256xf32>,
    %105 = vector.extract_strided_slice %61 {offsets = [0, 16], sizes = [8, 240], strides = [1, 1]} : vector<8x256xf32> to vector<8x240xf32>
    %106 = vector.extract_strided_slice %61 {offsets = [0, 0], sizes = [8, 16], strides = [1, 1]} : vector<8x256xf32> to vector<8x16xf32>
    %107 = tpu.concatenate %105, %106 in 1 : vector<8x240xf32>, vector<8x16xf32> -> vector<8x256xf32>
    %108 = vector.extract_strided_slice %0 {offsets = [6, 0], sizes = [1, 256], strides = [1, 1]} : vector<8x256xf32> to vector<1x256xf32>
    %109 = vector.broadcast %108 : vector<1x256xf32> to vector<8x256xf32>
    %110 = arith.mulf %107, %109 : vector<8x256xf32>
    %c56_29 = arith.constant 56 : index
    %c256_30 = arith.constant 256 : index
    %111 = vector.load %arg8[%c56_29, %c256_30] : memref<72x512xf32, #tpu.memory_space<vmem>>, vector<8x256xf32>
    tpu.vector_store %arg8[%c56_29, %c256_30], %110 {strides = array<i32>} : memref<72x512xf32, #tpu.memory_space<vmem>>, vector<8x256xf32>,
    %112 = vector.extract_strided_slice %61 {offsets = [0, 17], sizes = [8, 239], strides = [1, 1]} : vector<8x256xf32> to vector<8x239xf32>
    %113 = vector.extract_strided_slice %61 {offsets = [0, 0], sizes = [8, 17], strides = [1, 1]} : vector<8x256xf32> to vector<8x17xf32>
    %114 = tpu.concatenate %112, %113 in 1 : vector<8x239xf32>, vector<8x17xf32> -> vector<8x256xf32>
    %115 = vector.extract_strided_slice %0 {offsets = [7, 0], sizes = [1, 256], strides = [1, 1]} : vector<8x256xf32> to vector<1x256xf32>
    %116 = vector.broadcast %115 : vector<1x256xf32> to vector<8x256xf32>
    %117 = arith.mulf %114, %116 : vector<8x256xf32>
    %c64_31 = arith.constant 64 : index
    %c256_32 = arith.constant 256 : index
    %118 = vector.load %arg8[%c64_31, %c256_32] : memref<72x512xf32, #tpu.memory_space<vmem>>, vector<8x256xf32>
    tpu.vector_store %arg8[%c64_31, %c256_32], %117 {strides = array<i32>} : memref<72x512xf32, #tpu.memory_space<vmem>>, vector<8x256xf32>,
    %c0_33 = arith.constant 0 : index
    %c0_34 = arith.constant 0 : index
    %119 = vector.load %arg3[%c0_33, %c0_34] : memref<8x72xf32, #tpu.memory_space<vmem>>, vector<8x72xf32>
    %c0_35 = arith.constant 0 : index
    %c0_36 = arith.constant 0 : index
    %120 = vector.load %arg8[%c0_35, %c0_36] : memref<72x512xf32, #tpu.memory_space<vmem>>, vector<72x512xf32>
    %cst = arith.constant dense<0.000000e+00> : vector<8x512xf32>
    %121 = tpu.matmul %119, %120, %cst {dimension_numbers = #tpu.dot_dimension_numbers<[1], [0], [0], [1], [0, 0, 1, 1], [], []>} : vector<8x72xf32>, vector<72x512xf32>, vector<8x512xf32> -> vector<8x512xf32>
    %c0_37 = arith.constant 0 : index
    %c0_38 = arith.constant 0 : index
    %122 = vector.load %arg5[%c0_37, %c0_38] : memref<8x1xf32, #tpu.memory_space<vmem>>, vector<8x1xf32>
    %123 = vector.broadcast %122 : vector<8x1xf32> to vector<8x512xf32>
    %124 = arith.addf %121, %123 : vector<8x512xf32>
    %cst_39 = arith.constant 0.000000e+00 : f32
    %125 = vector.broadcast %cst_39 : f32 to vector<8x512xf32>
    %126 = arith.maximumf %124, %125 : vector<8x512xf32>
    %127 = vector.extract_strided_slice %126 {offsets = [0, 0], sizes = [8, 256], strides = [1, 1]} : vector<8x512xf32> to vector<8x256xf32>
    %128 = vector.extract_strided_slice %127 {offsets = [0, 239], sizes = [8, 17], strides = [1, 1]} : vector<8x256xf32> to vector<8x17xf32>
    %129 = vector.extract_strided_slice %127 {offsets = [0, 0], sizes = [8, 239], strides = [1, 1]} : vector<8x256xf32> to vector<8x239xf32>
    %130 = tpu.concatenate %128, %129 in 1 : vector<8x17xf32>, vector<8x239xf32> -> vector<8x256xf32>
    %131 = vector.extract_strided_slice %0 {offsets = [0, 0], sizes = [1, 256], strides = [1, 1]} : vector<8x256xf32> to vector<1x256xf32>
    %132 = vector.broadcast %131 : vector<1x256xf32> to vector<8x256xf32>
    %133 = arith.mulf %130, %132 : vector<8x256xf32>
    %c0_40 = arith.constant 0 : index
    %c0_41 = arith.constant 0 : index
    %134 = vector.load %arg8[%c0_40, %c0_41] : memref<72x512xf32, #tpu.memory_space<vmem>>, vector<8x256xf32>
    tpu.vector_store %arg8[%c0_40, %c0_41], %133 {strides = array<i32>} : memref<72x512xf32, #tpu.memory_space<vmem>>, vector<8x256xf32>,
    %135 = vector.extract_strided_slice %127 {offsets = [0, 240], sizes = [8, 16], strides = [1, 1]} : vector<8x256xf32> to vector<8x16xf32>
    %136 = vector.extract_strided_slice %127 {offsets = [0, 0], sizes = [8, 240], strides = [1, 1]} : vector<8x256xf32> to vector<8x240xf32>
    %137 = tpu.concatenate %135, %136 in 1 : vector<8x16xf32>, vector<8x240xf32> -> vector<8x256xf32>
    %138 = vector.extract_strided_slice %0 {offsets = [1, 0], sizes = [1, 256], strides = [1, 1]} : vector<8x256xf32> to vector<1x256xf32>
    %139 = vector.broadcast %138 : vector<1x256xf32> to vector<8x256xf32>
    %140 = arith.mulf %137, %139 : vector<8x256xf32>
    %c8_42 = arith.constant 8 : index
    %c0_43 = arith.constant 0 : index
    %141 = vector.load %arg8[%c8_42, %c0_43] : memref<72x512xf32, #tpu.memory_space<vmem>>, vector<8x256xf32>
    tpu.vector_store %arg8[%c8_42, %c0_43], %140 {strides = array<i32>} : memref<72x512xf32, #tpu.memory_space<vmem>>, vector<8x256xf32>,
    %142 = vector.extract_strided_slice %127 {offsets = [0, 241], sizes = [8, 15], strides = [1, 1]} : vector<8x256xf32> to vector<8x15xf32>
    %143 = vector.extract_strided_slice %127 {offsets = [0, 0], sizes = [8, 241], strides = [1, 1]} : vector<8x256xf32> to vector<8x241xf32>
    %144 = tpu.concatenate %142, %143 in 1 : vector<8x15xf32>, vector<8x241xf32> -> vector<8x256xf32>
    %145 = vector.extract_strided_slice %0 {offsets = [2, 0], sizes = [1, 256], strides = [1, 1]} : vector<8x256xf32> to vector<1x256xf32>
    %146 = vector.broadcast %145 : vector<1x256xf32> to vector<8x256xf32>
    %147 = arith.mulf %144, %146 : vector<8x256xf32>
    %c16_44 = arith.constant 16 : index
    %c0_45 = arith.constant 0 : index
    %148 = vector.load %arg8[%c16_44, %c0_45] : memref<72x512xf32, #tpu.memory_space<vmem>>, vector<8x256xf32>
    tpu.vector_store %arg8[%c16_44, %c0_45], %147 {strides = array<i32>} : memref<72x512xf32, #tpu.memory_space<vmem>>, vector<8x256xf32>,
    %149 = vector.extract_strided_slice %127 {offsets = [0, 255], sizes = [8, 1], strides = [1, 1]} : vector<8x256xf32> to vector<8x1xf32>
    %150 = vector.extract_strided_slice %127 {offsets = [0, 0], sizes = [8, 255], strides = [1, 1]} : vector<8x256xf32> to vector<8x255xf32>
    %151 = tpu.concatenate %149, %150 in 1 : vector<8x1xf32>, vector<8x255xf32> -> vector<8x256xf32>
    %152 = vector.extract_strided_slice %0 {offsets = [3, 0], sizes = [1, 256], strides = [1, 1]} : vector<8x256xf32> to vector<1x256xf32>
    %153 = vector.broadcast %152 : vector<1x256xf32> to vector<8x256xf32>
    %154 = arith.mulf %151, %153 : vector<8x256xf32>
    %c24_46 = arith.constant 24 : index
    %c0_47 = arith.constant 0 : index
    %155 = vector.load %arg8[%c24_46, %c0_47] : memref<72x512xf32, #tpu.memory_space<vmem>>, vector<8x256xf32>
    tpu.vector_store %arg8[%c24_46, %c0_47], %154 {strides = array<i32>} : memref<72x512xf32, #tpu.memory_space<vmem>>, vector<8x256xf32>,
    %c32_48 = arith.constant 32 : index
    %c0_49 = arith.constant 0 : index
    %156 = vector.load %arg8[%c32_48, %c0_49] : memref<72x512xf32, #tpu.memory_space<vmem>>, vector<8x256xf32>
    tpu.vector_store %arg8[%c32_48, %c0_49], %127 {strides = array<i32>} : memref<72x512xf32, #tpu.memory_space<vmem>>, vector<8x256xf32>,
    %157 = vector.extract_strided_slice %127 {offsets = [0, 1], sizes = [8, 255], strides = [1, 1]} : vector<8x256xf32> to vector<8x255xf32>
    %158 = vector.extract_strided_slice %127 {offsets = [0, 0], sizes = [8, 1], strides = [1, 1]} : vector<8x256xf32> to vector<8x1xf32>
    %159 = tpu.concatenate %157, %158 in 1 : vector<8x255xf32>, vector<8x1xf32> -> vector<8x256xf32>
    %160 = vector.extract_strided_slice %0 {offsets = [4, 0], sizes = [1, 256], strides = [1, 1]} : vector<8x256xf32> to vector<1x256xf32>
    %161 = vector.broadcast %160 : vector<1x256xf32> to vector<8x256xf32>
    %162 = arith.mulf %159, %161 : vector<8x256xf32>
    %c40_50 = arith.constant 40 : index
    %c0_51 = arith.constant 0 : index
    %163 = vector.load %arg8[%c40_50, %c0_51] : memref<72x512xf32, #tpu.memory_space<vmem>>, vector<8x256xf32>
    tpu.vector_store %arg8[%c40_50, %c0_51], %162 {strides = array<i32>} : memref<72x512xf32, #tpu.memory_space<vmem>>, vector<8x256xf32>,
    %164 = vector.extract_strided_slice %127 {offsets = [0, 15], sizes = [8, 241], strides = [1, 1]} : vector<8x256xf32> to vector<8x241xf32>
    %165 = vector.extract_strided_slice %127 {offsets = [0, 0], sizes = [8, 15], strides = [1, 1]} : vector<8x256xf32> to vector<8x15xf32>
    %166 = tpu.concatenate %164, %165 in 1 : vector<8x241xf32>, vector<8x15xf32> -> vector<8x256xf32>
    %167 = vector.extract_strided_slice %0 {offsets = [5, 0], sizes = [1, 256], strides = [1, 1]} : vector<8x256xf32> to vector<1x256xf32>
    %168 = vector.broadcast %167 : vector<1x256xf32> to vector<8x256xf32>
    %169 = arith.mulf %166, %168 : vector<8x256xf32>
    %c48_52 = arith.constant 48 : index
    %c0_53 = arith.constant 0 : index
    %170 = vector.load %arg8[%c48_52, %c0_53] : memref<72x512xf32, #tpu.memory_space<vmem>>, vector<8x256xf32>
    tpu.vector_store %arg8[%c48_52, %c0_53], %169 {strides = array<i32>} : memref<72x512xf32, #tpu.memory_space<vmem>>, vector<8x256xf32>,
    %171 = vector.extract_strided_slice %127 {offsets = [0, 16], sizes = [8, 240], strides = [1, 1]} : vector<8x256xf32> to vector<8x240xf32>
    %172 = vector.extract_strided_slice %127 {offsets = [0, 0], sizes = [8, 16], strides = [1, 1]} : vector<8x256xf32> to vector<8x16xf32>
    %173 = tpu.concatenate %171, %172 in 1 : vector<8x240xf32>, vector<8x16xf32> -> vector<8x256xf32>
    %174 = vector.extract_strided_slice %0 {offsets = [6, 0], sizes = [1, 256], strides = [1, 1]} : vector<8x256xf32> to vector<1x256xf32>
    %175 = vector.broadcast %174 : vector<1x256xf32> to vector<8x256xf32>
    %176 = arith.mulf %173, %175 : vector<8x256xf32>
    %c56_54 = arith.constant 56 : index
    %c0_55 = arith.constant 0 : index
    %177 = vector.load %arg8[%c56_54, %c0_55] : memref<72x512xf32, #tpu.memory_space<vmem>>, vector<8x256xf32>
    tpu.vector_store %arg8[%c56_54, %c0_55], %176 {strides = array<i32>} : memref<72x512xf32, #tpu.memory_space<vmem>>, vector<8x256xf32>,
    %178 = vector.extract_strided_slice %127 {offsets = [0, 17], sizes = [8, 239], strides = [1, 1]} : vector<8x256xf32> to vector<8x239xf32>
    %179 = vector.extract_strided_slice %127 {offsets = [0, 0], sizes = [8, 17], strides = [1, 1]} : vector<8x256xf32> to vector<8x17xf32>
    %180 = tpu.concatenate %178, %179 in 1 : vector<8x239xf32>, vector<8x17xf32> -> vector<8x256xf32>
    %181 = vector.extract_strided_slice %0 {offsets = [7, 0], sizes = [1, 256], strides = [1, 1]} : vector<8x256xf32> to vector<1x256xf32>
    %182 = vector.broadcast %181 : vector<1x256xf32> to vector<8x256xf32>
    %183 = arith.mulf %180, %182 : vector<8x256xf32>
    %c64_56 = arith.constant 64 : index
    %c0_57 = arith.constant 0 : index
    %184 = vector.load %arg8[%c64_56, %c0_57] : memref<72x512xf32, #tpu.memory_space<vmem>>, vector<8x256xf32>
    tpu.vector_store %arg8[%c64_56, %c0_57], %183 {strides = array<i32>} : memref<72x512xf32, #tpu.memory_space<vmem>>, vector<8x256xf32>,
    %185 = vector.extract_strided_slice %126 {offsets = [0, 256], sizes = [8, 256], strides = [1, 1]} : vector<8x512xf32> to vector<8x256xf32>
    %186 = vector.extract_strided_slice %185 {offsets = [0, 239], sizes = [8, 17], strides = [1, 1]} : vector<8x256xf32> to vector<8x17xf32>
    %187 = vector.extract_strided_slice %185 {offsets = [0, 0], sizes = [8, 239], strides = [1, 1]} : vector<8x256xf32> to vector<8x239xf32>
    %188 = tpu.concatenate %186, %187 in 1 : vector<8x17xf32>, vector<8x239xf32> -> vector<8x256xf32>
    %189 = vector.extract_strided_slice %0 {offsets = [0, 0], sizes = [1, 256], strides = [1, 1]} : vector<8x256xf32> to vector<1x256xf32>
    %190 = vector.broadcast %189 : vector<1x256xf32> to vector<8x256xf32>
    %191 = arith.mulf %188, %190 : vector<8x256xf32>
    %c0_58 = arith.constant 0 : index
    %c256_59 = arith.constant 256 : index
    %192 = vector.load %arg8[%c0_58, %c256_59] : memref<72x512xf32, #tpu.memory_space<vmem>>, vector<8x256xf32>
    tpu.vector_store %arg8[%c0_58, %c256_59], %191 {strides = array<i32>} : memref<72x512xf32, #tpu.memory_space<vmem>>, vector<8x256xf32>,
    %193 = vector.extract_strided_slice %185 {offsets = [0, 240], sizes = [8, 16], strides = [1, 1]} : vector<8x256xf32> to vector<8x16xf32>
    %194 = vector.extract_strided_slice %185 {offsets = [0, 0], sizes = [8, 240], strides = [1, 1]} : vector<8x256xf32> to vector<8x240xf32>
    %195 = tpu.concatenate %193, %194 in 1 : vector<8x16xf32>, vector<8x240xf32> -> vector<8x256xf32>
    %196 = vector.extract_strided_slice %0 {offsets = [1, 0], sizes = [1, 256], strides = [1, 1]} : vector<8x256xf32> to vector<1x256xf32>
    %197 = vector.broadcast %196 : vector<1x256xf32> to vector<8x256xf32>
    %198 = arith.mulf %195, %197 : vector<8x256xf32>
    %c8_60 = arith.constant 8 : index
    %c256_61 = arith.constant 256 : index
    %199 = vector.load %arg8[%c8_60, %c256_61] : memref<72x512xf32, #tpu.memory_space<vmem>>, vector<8x256xf32>
    tpu.vector_store %arg8[%c8_60, %c256_61], %198 {strides = array<i32>} : memref<72x512xf32, #tpu.memory_space<vmem>>, vector<8x256xf32>,
    %200 = vector.extract_strided_slice %185 {offsets = [0, 241], sizes = [8, 15], strides = [1, 1]} : vector<8x256xf32> to vector<8x15xf32>
    %201 = vector.extract_strided_slice %185 {offsets = [0, 0], sizes = [8, 241], strides = [1, 1]} : vector<8x256xf32> to vector<8x241xf32>
    %202 = tpu.concatenate %200, %201 in 1 : vector<8x15xf32>, vector<8x241xf32> -> vector<8x256xf32>
    %203 = vector.extract_strided_slice %0 {offsets = [2, 0], sizes = [1, 256], strides = [1, 1]} : vector<8x256xf32> to vector<1x256xf32>
    %204 = vector.broadcast %203 : vector<1x256xf32> to vector<8x256xf32>
    %205 = arith.mulf %202, %204 : vector<8x256xf32>
    %c16_62 = arith.constant 16 : index
    %c256_63 = arith.constant 256 : index
    %206 = vector.load %arg8[%c16_62, %c256_63] : memref<72x512xf32, #tpu.memory_space<vmem>>, vector<8x256xf32>
    tpu.vector_store %arg8[%c16_62, %c256_63], %205 {strides = array<i32>} : memref<72x512xf32, #tpu.memory_space<vmem>>, vector<8x256xf32>,
    %207 = vector.extract_strided_slice %185 {offsets = [0, 255], sizes = [8, 1], strides = [1, 1]} : vector<8x256xf32> to vector<8x1xf32>
    %208 = vector.extract_strided_slice %185 {offsets = [0, 0], sizes = [8, 255], strides = [1, 1]} : vector<8x256xf32> to vector<8x255xf32>
    %209 = tpu.concatenate %207, %208 in 1 : vector<8x1xf32>, vector<8x255xf32> -> vector<8x256xf32>
    %210 = vector.extract_strided_slice %0 {offsets = [3, 0], sizes = [1, 256], strides = [1, 1]} : vector<8x256xf32> to vector<1x256xf32>
    %211 = vector.broadcast %210 : vector<1x256xf32> to vector<8x256xf32>
    %212 = arith.mulf %209, %211 : vector<8x256xf32>
    %c24_64 = arith.constant 24 : index
    %c256_65 = arith.constant 256 : index
    %213 = vector.load %arg8[%c24_64, %c256_65] : memref<72x512xf32, #tpu.memory_space<vmem>>, vector<8x256xf32>
    tpu.vector_store %arg8[%c24_64, %c256_65], %212 {strides = array<i32>} : memref<72x512xf32, #tpu.memory_space<vmem>>, vector<8x256xf32>,
    %c32_66 = arith.constant 32 : index
    %c256_67 = arith.constant 256 : index
    %214 = vector.load %arg8[%c32_66, %c256_67] : memref<72x512xf32, #tpu.memory_space<vmem>>, vector<8x256xf32>
    tpu.vector_store %arg8[%c32_66, %c256_67], %185 {strides = array<i32>} : memref<72x512xf32, #tpu.memory_space<vmem>>, vector<8x256xf32>,
    %215 = vector.extract_strided_slice %185 {offsets = [0, 1], sizes = [8, 255], strides = [1, 1]} : vector<8x256xf32> to vector<8x255xf32>
    %216 = vector.extract_strided_slice %185 {offsets = [0, 0], sizes = [8, 1], strides = [1, 1]} : vector<8x256xf32> to vector<8x1xf32>
    %217 = tpu.concatenate %215, %216 in 1 : vector<8x255xf32>, vector<8x1xf32> -> vector<8x256xf32>
    %218 = vector.extract_strided_slice %0 {offsets = [4, 0], sizes = [1, 256], strides = [1, 1]} : vector<8x256xf32> to vector<1x256xf32>
    %219 = vector.broadcast %218 : vector<1x256xf32> to vector<8x256xf32>
    %220 = arith.mulf %217, %219 : vector<8x256xf32>
    %c40_68 = arith.constant 40 : index
    %c256_69 = arith.constant 256 : index
    %221 = vector.load %arg8[%c40_68, %c256_69] : memref<72x512xf32, #tpu.memory_space<vmem>>, vector<8x256xf32>
    tpu.vector_store %arg8[%c40_68, %c256_69], %220 {strides = array<i32>} : memref<72x512xf32, #tpu.memory_space<vmem>>, vector<8x256xf32>,
    %222 = vector.extract_strided_slice %185 {offsets = [0, 15], sizes = [8, 241], strides = [1, 1]} : vector<8x256xf32> to vector<8x241xf32>
    %223 = vector.extract_strided_slice %185 {offsets = [0, 0], sizes = [8, 15], strides = [1, 1]} : vector<8x256xf32> to vector<8x15xf32>
    %224 = tpu.concatenate %222, %223 in 1 : vector<8x241xf32>, vector<8x15xf32> -> vector<8x256xf32>
    %225 = vector.extract_strided_slice %0 {offsets = [5, 0], sizes = [1, 256], strides = [1, 1]} : vector<8x256xf32> to vector<1x256xf32>
    %226 = vector.broadcast %225 : vector<1x256xf32> to vector<8x256xf32>
    %227 = arith.mulf %224, %226 : vector<8x256xf32>
    %c48_70 = arith.constant 48 : index
    %c256_71 = arith.constant 256 : index
    %228 = vector.load %arg8[%c48_70, %c256_71] : memref<72x512xf32, #tpu.memory_space<vmem>>, vector<8x256xf32>
    tpu.vector_store %arg8[%c48_70, %c256_71], %227 {strides = array<i32>} : memref<72x512xf32, #tpu.memory_space<vmem>>, vector<8x256xf32>,
    %229 = vector.extract_strided_slice %185 {offsets = [0, 16], sizes = [8, 240], strides = [1, 1]} : vector<8x256xf32> to vector<8x240xf32>
    %230 = vector.extract_strided_slice %185 {offsets = [0, 0], sizes = [8, 16], strides = [1, 1]} : vector<8x256xf32> to vector<8x16xf32>
    %231 = tpu.concatenate %229, %230 in 1 : vector<8x240xf32>, vector<8x16xf32> -> vector<8x256xf32>
    %232 = vector.extract_strided_slice %0 {offsets = [6, 0], sizes = [1, 256], strides = [1, 1]} : vector<8x256xf32> to vector<1x256xf32>
    %233 = vector.broadcast %232 : vector<1x256xf32> to vector<8x256xf32>
    %234 = arith.mulf %231, %233 : vector<8x256xf32>
    %c56_72 = arith.constant 56 : index
    %c256_73 = arith.constant 256 : index
    %235 = vector.load %arg8[%c56_72, %c256_73] : memref<72x512xf32, #tpu.memory_space<vmem>>, vector<8x256xf32>
    tpu.vector_store %arg8[%c56_72, %c256_73], %234 {strides = array<i32>} : memref<72x512xf32, #tpu.memory_space<vmem>>, vector<8x256xf32>,
    %236 = vector.extract_strided_slice %185 {offsets = [0, 17], sizes = [8, 239], strides = [1, 1]} : vector<8x256xf32> to vector<8x239xf32>
    %237 = vector.extract_strided_slice %185 {offsets = [0, 0], sizes = [8, 17], strides = [1, 1]} : vector<8x256xf32> to vector<8x17xf32>
    %238 = tpu.concatenate %236, %237 in 1 : vector<8x239xf32>, vector<8x17xf32> -> vector<8x256xf32>
    %239 = vector.extract_strided_slice %0 {offsets = [7, 0], sizes = [1, 256], strides = [1, 1]} : vector<8x256xf32> to vector<1x256xf32>
    %240 = vector.broadcast %239 : vector<1x256xf32> to vector<8x256xf32>
    %241 = arith.mulf %238, %240 : vector<8x256xf32>
    %c64_74 = arith.constant 64 : index
    %c256_75 = arith.constant 256 : index
    %242 = vector.load %arg8[%c64_74, %c256_75] : memref<72x512xf32, #tpu.memory_space<vmem>>, vector<8x256xf32>
    tpu.vector_store %arg8[%c64_74, %c256_75], %241 {strides = array<i32>} : memref<72x512xf32, #tpu.memory_space<vmem>>, vector<8x256xf32>,
    %c0_76 = arith.constant 0 : index
    %c0_77 = arith.constant 0 : index
    %243 = vector.load %arg4[%c0_76, %c0_77] : memref<8x72xf32, #tpu.memory_space<vmem>>, vector<8x72xf32>
    %c0_78 = arith.constant 0 : index
    %c0_79 = arith.constant 0 : index
    %244 = vector.load %arg8[%c0_78, %c0_79] : memref<72x512xf32, #tpu.memory_space<vmem>>, vector<72x512xf32>
    %cst_80 = arith.constant dense<0.000000e+00> : vector<8x512xf32>
    %245 = tpu.matmul %243, %244, %cst_80 {dimension_numbers = #tpu.dot_dimension_numbers<[1], [0], [0], [1], [0, 0, 1, 1], [], []>} : vector<8x72xf32>, vector<72x512xf32>, vector<8x512xf32> -> vector<8x512xf32>
    %246 = vector.extract_strided_slice %245 {offsets = [0, 0], sizes = [8, 256], strides = [1, 1]} : vector<8x512xf32> to vector<8x256xf32>
    %c0_81 = arith.constant 0 : index
    %c0_82 = arith.constant 0 : index
    %247 = vector.load %arg6[%c0_81, %c0_82] : memref<8x1xf32, #tpu.memory_space<vmem>>, vector<8x1xf32>
    %248 = vector.broadcast %247 : vector<8x1xf32> to vector<8x256xf32>
    %249 = arith.addf %246, %248 : vector<8x256xf32>
    %c0_83 = arith.constant 0 : index
    %c0_84 = arith.constant 0 : index
    %c0_85 = arith.constant 0 : index
    %250 = vector.load %arg1[%c0_83, %c0_84, %c0_85] : memref<2x8x256xf32, #tpu.memory_space<vmem>>, vector<1x8x256xf32>
    %251 = vector.shape_cast %250 : vector<1x8x256xf32> to vector<8x256xf32>
    %252 = arith.addf %249, %251 : vector<8x256xf32>
    %cst_86 = arith.constant 0.000000e+00 : f32
    %253 = vector.broadcast %cst_86 : f32 to vector<8x256xf32>
    %254 = arith.maximumf %252, %253 : vector<8x256xf32>
    %c0_87 = arith.constant 0 : index
    %c0_88 = arith.constant 0 : index
    %c0_89 = arith.constant 0 : index
    %255 = vector.load %arg7[%c0_87, %c0_88, %c0_89] : memref<2x8x256xf32, #tpu.memory_space<vmem>>, vector<1x8x256xf32>
    %256 = vector.shape_cast %255 : vector<1x8x256xf32> to vector<8x256xf32>
    %257 = vector.shape_cast %254 : vector<8x256xf32> to vector<1x8x256xf32>
    tpu.vector_store %arg7[%c0_87, %c0_88, %c0_89], %257 {strides = array<i32>} : memref<2x8x256xf32, #tpu.memory_space<vmem>>, vector<1x8x256xf32>,
    %258 = vector.extract_strided_slice %245 {offsets = [0, 256], sizes = [8, 256], strides = [1, 1]} : vector<8x512xf32> to vector<8x256xf32>
    %c0_90 = arith.constant 0 : index
    %c0_91 = arith.constant 0 : index
    %259 = vector.load %arg6[%c0_90, %c0_91] : memref<8x1xf32, #tpu.memory_space<vmem>>, vector<8x1xf32>
    %260 = vector.broadcast %259 : vector<8x1xf32> to vector<8x256xf32>
    %261 = arith.addf %258, %260 : vector<8x256xf32>
    %c1_92 = arith.constant 1 : index
    %c0_93 = arith.constant 0 : index
    %c0_94 = arith.constant 0 : index
    %262 = vector.load %arg1[%c1_92, %c0_93, %c0_94] : memref<2x8x256xf32, #tpu.memory_space<vmem>>, vector<1x8x256xf32>
    %263 = vector.shape_cast %262 : vector<1x8x256xf32> to vector<8x256xf32>
    %264 = arith.addf %261, %263 : vector<8x256xf32>
    %cst_95 = arith.constant 0.000000e+00 : f32
    %265 = vector.broadcast %cst_95 : f32 to vector<8x256xf32>
    %266 = arith.maximumf %264, %265 : vector<8x256xf32>
    %c1_96 = arith.constant 1 : index
    %c0_97 = arith.constant 0 : index
    %c0_98 = arith.constant 0 : index
    %267 = vector.load %arg7[%c1_96, %c0_97, %c0_98] : memref<2x8x256xf32, #tpu.memory_space<vmem>>, vector<1x8x256xf32>
    %268 = vector.shape_cast %267 : vector<1x8x256xf32> to vector<8x256xf32>
    %269 = vector.shape_cast %266 : vector<8x256xf32> to vector<1x8x256xf32>
    tpu.vector_store %arg7[%c1_96, %c0_97, %c0_98], %269 {strides = array<i32>} : memref<2x8x256xf32, #tpu.memory_space<vmem>>, vector<1x8x256xf32>,
    return
  }
  func.func @transform_0(%arg0: i32) -> (i32, i32, i32) {
    %c0_i32 = arith.constant 0 : i32
    %c0_i32_0 = arith.constant 0 : i32
    %c0_i32_1 = arith.constant 0 : i32
    return %arg0, %c0_i32, %c0_i32_0 : i32, i32, i32
  }
  func.func @transform_1(%arg0: i32) -> (i32, i32) {
    %c0_i32 = arith.constant 0 : i32
    %c0_i32_0 = arith.constant 0 : i32
    %c0_i32_1 = arith.constant 0 : i32
    return %c0_i32, %c0_i32_0 : i32, i32
  }
  func.func @transform_2(%arg0: i32) -> (i32, i32) {
    %c0_i32 = arith.constant 0 : i32
    %c0_i32_0 = arith.constant 0 : i32
    %c0_i32_1 = arith.constant 0 : i32
    return %c0_i32, %c0_i32_0 : i32, i32
  }
  func.func @transform_3(%arg0: i32) -> (i32, i32) {
    %c0_i32 = arith.constant 0 : i32
    %c0_i32_0 = arith.constant 0 : i32
    %c0_i32_1 = arith.constant 0 : i32
    return %c0_i32, %c0_i32_0 : i32, i32
  }
  func.func @transform_4(%arg0: i32) -> (i32, i32) {
    %c0_i32 = arith.constant 0 : i32
    %c0_i32_0 = arith.constant 0 : i32
    %c0_i32_1 = arith.constant 0 : i32
    return %c0_i32, %c0_i32_0 : i32, i32
  }
  func.func @transform_5(%arg0: i32) -> (i32, i32) {
    %c0_i32 = arith.constant 0 : i32
    %c0_i32_0 = arith.constant 0 : i32
    %c0_i32_1 = arith.constant 0 : i32
    return %c0_i32, %c0_i32_0 : i32, i32
  }
  func.func @transform_6(%arg0: i32) -> (i32, i32, i32) {
    %c0_i32 = arith.constant 0 : i32
    %c0_i32_0 = arith.constant 0 : i32
    %c0_i32_1 = arith.constant 0 : i32
    return %arg0, %c0_i32, %c0_i32_0 : i32, i32, i32
  }
}

</mosaic_0001>

<bundles_post_ra>
// kernel: tpu_custom_call.1
= control target key start
LH: loop header
LB: loop body
LE: loop exit
PB: predicated region body
PF: predicated region fallthrough
CT: control target
= control target key end

     0   :  { %6 = vsyncpa [#allocation3], 0  ;;  %s137_s0 = inlined_call_operand.hbm [shape: f32[8,256], index: 0, kind: input, shape index: {}]   ;;  %s138_s1 = inlined_call_operand.hbm [shape: f32[8,256], index: 1, kind: output, shape index: {}]  }
   0x1   :  { %7 = vsyncpa [#allocation4], 0  ;;  %s100_s6 = smov [#allocation2]   ;;  %s52_s10 = scalar_lea.hbm %s137_s0, 256 }
   0x2   :  { %s14_s7 = sshll.u32 %s100_s6, 4  ;;  %p53_p0 = scmp.ne.s32.totalorder %s137_s0, %s52_s10  ;;  %s15_s7 = int_to_ptr.vmem [resolvable:$true] %s14_s7 }
   0x3   :  { %p56_p1 = scmp.lt.u32.totalorder %s52_s10, %s137_s0 }
   0x5   :  { %p58_p2 = pnand %p56_p1, %p53_p0 }
   0x7   :  { %61 = shalt.err (!%p58_p2)
}
   0x8   :  { %s62_s15 = scalar_lea.vmem %s15_s7, 256  ;;  %p67_p4 = scmp.lt.s32.totalorder %s15_s7, %s15_s7 }
   0x9   :  { %p63_p3 = scmp.ne.s32.totalorder %s15_s7, %s62_s15  ;;  %p68_p5 = scmp.lt.s32.totalorder %s62_s15, %s62_s15 }
   0xb   :  { %p69_p6 = por %p68_p5, %p67_p4 }
   0xd   :  { %p70_p7 = pnand %p69_p6, %p63_p3 }
   0xf   :  { %73 = shalt.err (!%p70_p7)
}
  0x10   :  { %17 = dma.hbm_to_vmem [thread:$0]  %s137_s0, 256, %s15_s7, [#allocation3]  }
  0x11   :  { %96 = dma.done.wait [#allocation3], 256  }
  0x12   :  { %97 = vsyncadd [#allocation3], 4294967040  ;;  %v21_v0 = vld [vmem:[#allocation2] sm:$0xff]  ;;  %s101_s18 = smov 5   ;;  %v22_v1 = vld [vmem:[#allocation2 + $0x8] sm:$0xff]  ;;  %v27_v2 = vlaneseq  ;;  %s102_s19 = smov [#allocation5]  }
  0x13   :  { %23 = vrot.lane.b32.xlu0 %v21_v0, %s101_s18  ;;  %s40_s20 = sshll.u32 %s102_s19, 4  ;;  %s41_s20 = int_to_ptr.vmem [resolvable:$true] %s40_s20 }
  0x14   :  { %v28_v3 = vand.u32 127, %v27_v2  ;;  %s74_s0 = scalar_lea.vmem %s41_s20, 256  ;;  %p79_p9 = scmp.lt.s32.totalorder %s41_s20, %s41_s20 }
  0x15   :  { %p75_p8 = scmp.ne.s32.totalorder %s41_s20, %s74_s0  ;;  %p80_p10 = scmp.lt.s32.totalorder %s74_s0, %s74_s0 }
  0x16   :  { %vm29_vm0 = vcmp.lt.s32.totalorder %v28_v3, 5 }
  0x17   :  { %25 = vrot.lane.b32.xlu0 %v22_v1, %s101_s18  ;;  %p81_p11 = por %p80_p10, %p79_p9 }
  0x19   :  { %p82_p12 = pnand %p81_p11, %p75_p8 }
  0x85   :  { %v24_v4 = vpop.permute.xlu0 %23 }
  0x89   :  { %v26_v5 = vpop.permute.xlu0 %25 }
  0x8a   :  { %v30_v6 = vsel %vm29_vm0, %v24_v4, %v26_v5  ;;  %v31_v7 = vsel %vm29_vm0, %v26_v5, %v24_v4 }
  0x8b   :  { %32 = vst [vmem:[#allocation5] sm:$0xff] %v31_v7  ;;  %33 = vst [vmem:[#allocation5 + $0x8] sm:$0xff] %v30_v6 }
  0x8c   :  { %85 = shalt.err (!%p82_p12)
}
  0x8d   :  { %s86_s23 = scalar_lea.hbm %s138_s1, 256 }
  0x8e   :  { %p87_p13 = scmp.ne.s32.totalorder %s138_s1, %s86_s23  ;;  %p90_p0 = scmp.lt.u32.totalorder %s86_s23, %s138_s1 }
  0x90   :  { %p92_p1 = pnand %p90_p0, %p87_p13 }
  0x92   :  { %95 = shalt.err (!%p92_p1)
}
  0x93   :  { %43 = dma.vmem_to_hbm [thread:$0]  %s41_s20, 256, %s138_s1, [#allocation4]  }
  0x94   :  { %98 = dma.done.wait [#allocation4], 256  }
  0x95   :  { %99 = vsyncadd [#allocation4], 4294967040 }
  0x96   :  { %47 = vsyncpa [#allocation3], 1 }
  0x97   :  { %48 = vsyncpa [#allocation4], 1 }

// kernel: _basic_block_forward.1
= control target key start
LH: loop header
LB: loop body
LE: loop exit
PB: predicated region body
PF: predicated region fallthrough
CT: control target
= control target key end

     0   :  { %s1399_s21 = smov 0   ;;  %s1807_s0 = inlined_call_operand.vmem [shape: f32[4,8,256], index: 0, kind: input, shape index: {}]   ;;  %s1808_s1 = inlined_call_operand.vmem [shape: f32[8,256], index: 1, kind: input, shape index: {}]   ;;  %s1809_s2 = inlined_call_operand.vmem [shape: f32[8,72], index: 2, kind: input, shape index: {}]   ;;  %s1810_s3 = inlined_call_operand.vmem [shape: f32[8,72], index: 3, kind: input, shape index: {}]   ;;  %s1811_s4 = inlined_call_operand.vmem [shape: f32[8,1], index: 4, kind: input, shape index: {}]   ;;  %s1812_s5 = inlined_call_operand.vmem [shape: f32[8,1], index: 5, kind: input, shape index: {}]   ;;  %s1813_s6 = inlined_call_operand.vmem [shape: f32[4,8,256], index: 6, kind: output, shape index: {}]  }
   0x1 LB: > { %s1237_s22 = sadd.s32 4294967295, %s1352_s21   ;;  %p1241_p0 = scmp.ge.s32.totalorder %s1352_s21, 1  ;;  %s1352_s21 = sphi %s1399_s21, %s16_s21  }
   0x2   : > { %p214_p1 = scmp.lt.s32.totalorder %s1352_s21, 3 }
   0x4   : > { %p215_p2 = pnand %p1241_p0, %p214_p1 }
   0x5   : > { %s1242_s23 = sshll.u32 (!%p215_p2), %s1237_s22, 1  ;;  %s1354_s28 = smov (!%p215_p2), 16   ;;  %v1361_v4 = vmov (!%p215_p2), 0.0   ;;  %v1362_v5 = vmov (!%p215_p2), 0   ;;  %v592_v6 = vld [vmem:[%s1811_s4] sm:$0xff] (!%p215_p2)  ;;  %v276_v7 = vlaneseq (!%p215_p2)  ;;  %v1504_v12 = vld [vmem:[%s1808_s1 + $0x8] sm:$0xff] (!%p215_p2) }
   0x6   : > { %218 = sbr.rel (%p215_p2) target bundleno = 813 (0x32d), region = 44  ;;  %p247_p3 = scmp.lt.s32.totalorder (!%p215_p2), %s1242_s23, 3  ;;  %666 = vmatprep.mubr.f32.mxu0 (!%p215_p2), %v1361_v4  ;;  %737 = vmatprep.mubr.f32.mxu1 (!%p215_p2), %v1361_v4  ;;  %v1499_v11 = vld [vmem:[%s1808_s1] sm:$0xff] (!%p215_p2)  ;;  %vm293_vm0 = vcmask (!%p215_p2), 130048   ;;  %vm271_vm1 = vcmask (!%p215_p2), 138240   ;;  %vm315_vm2 = vcmask (!%p215_p2), 121856  }
   0x7   : > { %s1355_s29 = smov (!%p215_p2), 17   ;;  %s1356_s30 = smov (!%p215_p2), 15   ;;  %1344 = vset.pattern.permute.xlu0 (!%p215_p2), %v1362_v5  ;;  %1345 = vset.pattern.permute.xlu1 (!%p215_p2), %v1362_v5  ;;  %v1492_v8 = vshrl.u32 (!%p215_p2), %v276_v7, 7  ;;  %vm337_vm3 = vcmask (!%p215_p2), 7168   ;;  %vm360_vm4 = vcmask (!%p215_p2), 1039360   ;;  %vm382_vm5 = vcmask (!%p215_p2), 924672  }
   0x8   : > { %s1357_s7 = smov (!%p215_p2), 1   ;;  %s1358_s8 = smov (!%p215_p2), 127   ;;  %vm404_vm6 = vcmask (!%p215_p2), 916480   ;;  %vm426_vm7 = vcmask (!%p215_p2), 908288   ;;  %vm598_vm8 = vcmask (!%p215_p2), 588800  }
   0x9   : > { %s1359_s9 = smov (!%p215_p2), 113   ;;  %s1360_s10 = smov (!%p215_p2), 112   ;;  %v300_v9 = vsub.s32 (!%p215_p2), 1, %v1492_v8  ;;  %v278_v10 = vsub.s32 (!%p215_p2), 0, %v1492_v8  ;;  %v322_v39 = vsub.s32 (!%p215_p2), 2, %v1492_v8  ;;  %v344_v40 = vsub.s32 (!%p215_p2), 3, %v1492_v8 }
   0xa   : > { %s1363_s11 = smov (!%p215_p2), 111  }
   0xb   : > { %v1507_v15 = vrot.slane (!%p215_p2), %v1499_v11, %v300_v9  ;;  %v1510_v16 = vrot.slane (!%p215_p2), %v1499_v11, %v278_v10  ;;  %v1513_v17 = vrot.slane (!%p215_p2), %v1504_v12, %v278_v10  ;;  %v1516_v18 = vrot.slane (!%p215_p2), %v1504_v12, %v300_v9 }
   0xc   : > { %v1537_v49 = vrot.slane (!%p215_p2), %v1499_v11, %v322_v39  ;;  %v1540_v50 = vrot.slane (!%p215_p2), %v1504_v12, %v322_v39  ;;  %v1543_v51 = vrot.slane (!%p215_p2), %v1499_v11, %v344_v40  ;;  %v1546_v52 = vrot.slane (!%p215_p2), %v1504_v12, %v344_v40 }
   0xd   : > { %s1815_s23 = smov (!%p247_p3, %s1242_s23), 3  ;;  %v368_v9 = vsub.s32 4, %v1492_v8 }
   0xe   : > { %s1260_s24 = sshll.u32 %s1815_s23, 4 }
   0xf   : > { %s251_s27 = scalar_lea.vmem %s1807_s0, %s1260_s24 }
  0x10   : > { %v1415_v0 = vld [vmem:[%s251_s27 + $0x8] sm:$0xff]  ;;  %v1421_v1 = vld [vmem:[%s251_s27] sm:$0xff]  ;;  %v1427_v2 = vld [vmem:[%s251_s27 + $0x10] sm:$0xff] }
  0x11   : > { %288 = vrot.lane.b32.xlu1 %v1415_v0, %s1354_s28  ;;  %265 = vrot.lane.b32.xlu0 %v1415_v0, %s1355_s29  ;;  %v1429_v3 = vld [vmem:[%s251_s27 + $0x18] sm:$0xff] }
  0x15   : > { %291 = vrot.lane.b32.xlu1 %v1421_v1, %s1354_s28  ;;  %269 = vrot.lane.b32.xlu0 %v1421_v1, %s1355_s29 }
  0x19   : > { %452 = vrot.lane.b32.xlu1 %v1427_v2, %s1355_s29  ;;  %448 = vrot.lane.b32.xlu0 %v1429_v3, %s1355_s29 }
  0x1d   : > { %465 = vrot.lane.b32.xlu1 %v1427_v2, %s1354_s28  ;;  %462 = vrot.lane.b32.xlu0 %v1429_v3, %s1354_s28 }
  0x21   : > { %313 = vrot.lane.b32.xlu1 %v1421_v1, %s1356_s30  ;;  %310 = vrot.lane.b32.xlu0 %v1415_v0, %s1356_s30 }
  0x25   : > { %335 = vrot.lane.b32.xlu1 %v1421_v1, %s1357_s7  ;;  %332 = vrot.lane.b32.xlu0 %v1415_v0, %s1357_s7 }
  0x29   : > { %478 = vrot.lane.b32.xlu1 %v1427_v2, %s1356_s30  ;;  %475 = vrot.lane.b32.xlu0 %v1429_v3, %s1356_s30 }
  0x2d   : > { %491 = vrot.lane.b32.xlu1 %v1427_v2, %s1357_s7  ;;  %488 = vrot.lane.b32.xlu0 %v1429_v3, %s1357_s7 }
  0x31   : > { %358 = vrot.lane.b32.xlu1 %v1415_v0, %s1358_s8  ;;  %356 = vrot.lane.b32.xlu0 %v1421_v1, %s1358_s8 }
  0x35   : > { %505 = vrot.lane.b32.xlu1 %v1429_v3, %s1358_s8  ;;  %503 = vrot.lane.b32.xlu0 %v1427_v2, %s1358_s8 }
  0x39   : > { %380 = vrot.lane.b32.xlu1 %v1415_v0, %s1359_s9  ;;  %378 = vrot.lane.b32.xlu0 %v1421_v1, %s1359_s9 }
  0x3d   : > { %402 = vrot.lane.b32.xlu1 %v1415_v0, %s1360_s10  ;;  %400 = vrot.lane.b32.xlu0 %v1421_v1, %s1360_s10 }
  0x41   : > { %518 = vrot.lane.b32.xlu1 %v1429_v3, %s1359_s9  ;;  %516 = vrot.lane.b32.xlu0 %v1427_v2, %s1359_s9 }
  0x45   : > { %531 = vrot.lane.b32.xlu1 %v1429_v3, %s1360_s10  ;;  %529 = vrot.lane.b32.xlu0 %v1427_v2, %s1360_s10 }
  0x49   : > { %424 = vrot.lane.b32.xlu1 %v1415_v0, %s1363_s11  ;;  %422 = vrot.lane.b32.xlu0 %v1421_v1, %s1363_s11 }
  0x4d   : > { %544 = vrot.lane.b32.xlu1 %v1429_v3, %s1363_s11  ;;  %542 = vrot.lane.b32.xlu0 %v1427_v2, %s1363_s11 }
  0x51   : > { %595 = vperm.xlu0 %1344, %v592_v6  }
  0x83   : > { %v289_v13 = vpop.permute.xlu1 %288  ;;  %v266_v14 = vpop.permute.xlu0 %265 }
  0x87   : > { %v292_v19 = vpop.permute.xlu1 %291  ;;  %v270_v20 = vpop.permute.xlu0 %269 }
  0x88   : > { %v294_v21 = vsel %vm293_vm0, %v292_v19, %v289_v13  ;;  %v297_v22 = vsel %vm293_vm0, %v289_v13, %v292_v19  ;;  %v272_v23 = vsel %vm271_vm1, %v270_v20, %v266_v14  ;;  %v275_v24 = vsel %vm271_vm1, %v266_v14, %v270_v20 }
  0x89   : > { %v306_v25 = vmul.f32 %v1507_v15, %v297_v22  ;;  %v284_v26 = vmul.f32 %v1510_v16, %v275_v24  ;;  %v285_v27 = vmul.f32 %v1513_v17, %v272_v23  ;;  %v307_v28 = vmul.f32 %v1516_v18, %v294_v21 }
  0x8a   : > { %v1562_v22 = vrot.slane %v1499_v11, %v368_v9  ;;  %v1565_v23 = vrot.slane %v1504_v12, %v368_v9 }
  0x8b   : > { %v453_v29 = vpop.permute.xlu1 %452  ;;  %v449_v30 = vpop.permute.xlu0 %448  ;;  %v1262_v31 = vpack.c.bf16 %v307_v28, %v285_v27  ;;  %v1264_v32 = vpack.c.bf16 %v306_v25, %v284_v26 }
  0x8c   : > { %v454_v33 = vsel %vm271_vm1, %v453_v29, %v449_v30  ;;  %v457_v34 = vsel %vm271_vm1, %v449_v30, %v453_v29 }
  0x8d   : > { %1263 = vmatprep.subr.bf16.mxu0 %v1262_v31  ;;  %v458_v41 = vmul.f32 %v457_v34, %v1510_v16  ;;  %v459_v43 = vmul.f32 %v454_v33, %v1513_v17 }
  0x8e   : > { %1265 = vmatpush1.bf16.msra.mxu0 %v1264_v32 }
  0x8f   : > { %v466_v35 = vpop.permute.xlu1 %465  ;;  %v463_v36 = vpop.permute.xlu0 %462 }
  0x90   : > { %v467_v37 = vsel %vm293_vm0, %v466_v35, %v463_v36  ;;  %v470_v38 = vsel %vm293_vm0, %v463_v36, %v466_v35 }
  0x91   : > { %v471_v42 = vmul.f32 %v470_v38, %v1507_v15  ;;  %v472_v44 = vmul.f32 %v467_v37, %v1516_v18 }
  0x93   : > { %v314_v45 = vpop.permute.xlu1 %313  ;;  %v311_v46 = vpop.permute.xlu0 %310  ;;  %v1278_v47 = vpack.c.bf16 %v472_v44, %v459_v43  ;;  %v1280_v48 = vpack.c.bf16 %v471_v42, %v458_v41  ;;  %v390_v42 = vsub.s32 5, %v1492_v8 }
  0x94   : > { %v316_v53 = vsel %vm315_vm2, %v314_v45, %v311_v46  ;;  %v319_v54 = vsel %vm315_vm2, %v311_v46, %v314_v45  ;;  %v412_v45 = vsub.s32 6, %v1492_v8 }
  0x95   : > { %1279 = vmatprep.subr.bf16.mxu1 %v1278_v47  ;;  %v328_v59 = vmul.f32 %v1537_v49, %v319_v54  ;;  %v329_v60 = vmul.f32 %v1540_v50, %v316_v53  ;;  %v1586_v54 = vrot.slane %v1499_v11, %v390_v42 }
  0x96   : > { %1281 = vmatpush1.bf16.msra.mxu1 %v1280_v48 }
  0x97   : > { %v336_v55 = vpop.permute.xlu1 %335  ;;  %v333_v56 = vpop.permute.xlu0 %332 }
  0x98   : > { %v338_v57 = vsel %vm337_vm3, %v336_v55, %v333_v56  ;;  %v341_v58 = vsel %vm337_vm3, %v333_v56, %v336_v55  ;;  %v1589_v55 = vrot.slane %v1504_v12, %v390_v42  ;;  %v1592_v56 = vrot.slane %v1499_v11, %v412_v45 }
  0x99   : > { %v350_v61 = vmul.f32 %v1543_v51, %v341_v58  ;;  %v351_v62 = vmul.f32 %v1546_v52, %v338_v57  ;;  %v1595_v57 = vrot.slane %v1504_v12, %v412_v45 }
  0x9b   : > { %v479_v63 = vpop.permute.xlu1 %478  ;;  %v476_v5 = vpop.permute.xlu0 %475  ;;  %v1266_v6 = vpack.c.bf16 %v351_v62, %v329_v60  ;;  %v1268_v7 = vpack.c.bf16 %v350_v61, %v328_v59 }
  0x9c   : > { %v480_v10 = vsel %vm315_vm2, %v479_v63, %v476_v5  ;;  %v483_v13 = vsel %vm315_vm2, %v476_v5, %v479_v63 }
  0x9d   : > { %1267 = vmatprep.subr.bf16.mxu0 %v1266_v6  ;;  %v484_v24 = vmul.f32 %v483_v13, %v1537_v49  ;;  %v485_v25 = vmul.f32 %v480_v10, %v1540_v50 }
  0x9e   : > { %1269 = vmatpush1.bf16.msra.mxu0 %v1268_v7 }
  0x9f   : > { %v492_v14 = vpop.permute.xlu1 %491  ;;  %v489_v19 = vpop.permute.xlu0 %488 }
  0xa0   : > { %v493_v20 = vsel %vm337_vm3, %v492_v14, %v489_v19  ;;  %v496_v21 = vsel %vm337_vm3, %v489_v19, %v492_v14 }
  0xa1   : > { %v497_v26 = vmul.f32 %v496_v21, %v1543_v51  ;;  %v498_v27 = vmul.f32 %v493_v20, %v1546_v52  ;;  %v434_v20 = vsub.s32 7, %v1492_v8 }
  0xa3   : > { %v359_v28 = vpop.permute.xlu1 %358  ;;  %v357_v29 = vpop.permute.xlu0 %356  ;;  %v1282_v30 = vpack.c.bf16 %v498_v27, %v485_v25  ;;  %v1284_v31 = vpack.c.bf16 %v497_v26, %v484_v24 }
  0xa4   : > { %v361_v32 = vsel %vm360_vm4, %v357_v29, %v359_v28  ;;  %v365_v33 = vsel %vm360_vm4, %v359_v28, %v357_v29  ;;  %v1611_v29 = vrot.slane %v1499_v11, %v434_v20 }
  0xa5   : > { %v374_v34 = vmul.f32 %v1562_v22, %v361_v32  ;;  %v375_v35 = vmul.f32 %v1565_v23, %v365_v33  ;;  %1283 = vmatprep.subr.bf16.mxu1 %v1282_v30  ;;  %v1614_v30 = vrot.slane %v1504_v12, %v434_v20 }
  0xa6   : > { %1285 = vmatpush1.bf16.msra.mxu1 %v1284_v31 }
  0xa7   : > { %v506_v36 = vpop.permute.xlu1 %505  ;;  %v504_v37 = vpop.permute.xlu0 %503  ;;  %v1270_v38 = vpack.c.bf16 %v375_v35, %v1415_v0  ;;  %v1272_v39 = vpack.c.bf16 %v374_v34, %v1421_v1 }
  0xa8   : > { %v507_v40 = vsel %vm360_vm4, %v504_v37, %v506_v36  ;;  %v511_v41 = vsel %vm360_vm4, %v506_v36, %v504_v37 }
  0xa9   : > { %v512_v43 = vmul.f32 %v507_v40, %v1562_v22  ;;  %v513_v44 = vmul.f32 %v511_v41, %v1565_v23  ;;  %1271 = vmatprep.subr.bf16.mxu0 %v1270_v38  ;;  %v555_v40 = vld [vmem:[%s1809_s2] sm:$0xff] }
  0xaa   : > { %1273 = vmatpush1.bf16.msra.mxu0 %v1272_v39 }
  0xab   : > { %v381_v46 = vpop.permute.xlu1 %380  ;;  %v379_v47 = vpop.permute.xlu0 %378  ;;  %v1286_v48 = vpack.c.bf16 %v513_v44, %v1429_v3  ;;  %v1288_v53 = vpack.c.bf16 %v512_v43, %v1427_v2 }
  0xac   : > { %v383_v58 = vsel %vm382_vm5, %v379_v47, %v381_v46  ;;  %v387_v59 = vsel %vm382_vm5, %v381_v46, %v379_v47 }
  0xad   : > { %1287 = vmatprep.subr.bf16.mxu1 %v1286_v48  ;;  %v396_v5 = vmul.f32 %v1586_v54, %v383_v58  ;;  %v397_v6 = vmul.f32 %v1589_v55, %v387_v59 }
  0xae   : > { %1289 = vmatpush1.bf16.msra.mxu1 %v1288_v53 }
  0xaf   : > { %v403_v60 = vpop.permute.xlu1 %402  ;;  %v401_v61 = vpop.permute.xlu0 %400 }
  0xb0   : > { %v405_v62 = vsel %vm404_vm6, %v401_v61, %v403_v60  ;;  %v409_v63 = vsel %vm404_vm6, %v403_v60, %v401_v61 }
  0xb1   : > { %v418_v7 = vmul.f32 %v1592_v56, %v405_v62  ;;  %v419_v9 = vmul.f32 %v1595_v57, %v409_v63 }
  0xb3   : > { %v519_v10 = vpop.permute.xlu1 %518  ;;  %v517_v13 = vpop.permute.xlu0 %516  ;;  %v1274_v14 = vpack.c.bf16 %v419_v9, %v397_v6  ;;  %v1276_v19 = vpack.c.bf16 %v418_v7, %v396_v5  ;;  %v1146_v9 = vld [vmem:[%s1812_s5] sm:$0xff] }
  0xb4   : > { %v520_v21 = vsel %vm382_vm5, %v517_v13, %v519_v10  ;;  %v524_v24 = vsel %vm382_vm5, %v519_v10, %v517_v13 }
  0xb5   : > { %1275 = vmatprep.subr.bf16.mxu0 %v1274_v14  ;;  %v525_v8 = vmul.f32 %v520_v21, %v1586_v54  ;;  %v526_v31 = vmul.f32 %v524_v24, %v1589_v55 }
  0xb6   : > { %1277 = vmatpush1.bf16.msra.mxu0 %v1276_v19 }
  0xb7   : > { %v532_v25 = vpop.permute.xlu1 %531  ;;  %v530_v26 = vpop.permute.xlu0 %529 }
  0xb8   : > { %v533_v27 = vsel %vm404_vm6, %v530_v26, %v532_v25  ;;  %v537_v28 = vsel %vm404_vm6, %v532_v25, %v530_v26 }
  0xb9   : > { %v538_v32 = vmul.f32 %v533_v27, %v1592_v56  ;;  %v539_v33 = vmul.f32 %v537_v28, %v1595_v57 }
  0xbb   : > { %v425_v34 = vpop.permute.xlu1 %424  ;;  %v423_v35 = vpop.permute.xlu0 %422  ;;  %v1290_v36 = vpack.c.bf16 %v539_v33, %v526_v31  ;;  %v1292_v37 = vpack.c.bf16 %v538_v32, %v525_v8 }
  0xbc   : > { %v427_v38 = vsel %vm426_vm7, %v423_v35, %v425_v34  ;;  %v431_v11 = vsel %vm426_vm7, %v425_v34, %v423_v35 }
  0xbd   : > { %v440_v39 = vmul.f32 %v1611_v29, %v427_v38  ;;  %v441_v12 = vmul.f32 %v1614_v30, %v431_v11  ;;  %1291 = vmatprep.subr.bf16.mxu1 %v1290_v36 }
  0xbe   : > { %1293 = vmatpush1.bf16.msra.mxu1 %v1292_v37 }
  0xbf   : > { %v545_v41 = vpop.permute.xlu1 %544  ;;  %618 = vmatprep.subr.mxu0 %v441_v12  ;;  %v543_v42 = vpop.permute.xlu0 %542 }
  0xc0   : > { %v546_v43 = vsel %vm426_vm7, %v543_v42, %v545_v41  ;;  %v550_v44 = vsel %vm426_vm7, %v545_v41, %v543_v42  ;;  %619 = vmatpush1.msra.mxu0 %v440_v39 }
  0xc1   : > { %v551_v45 = vmul.f32 %v546_v43, %v1611_v29  ;;  %v552_v46 = vmul.f32 %v550_v44, %v1614_v30  ;;  %1250 = vmatmul.mubr.msk.f32.vlgmr.msra.gmra.mrb[0].mxu0 %vm598_vm8, %v555_v40 }
  0xc2   : > { %1068 = vmatprep.mubr.f32.mxu0 %v1361_v4 }
  0xc3   : > { %689 = vmatprep.subr.mxu1 %v552_v46 }
  0xc4   : > { %690 = vmatpush1.msra.mxu1 %v551_v45 }
  0xc5   : > { %1251 = vmatmul.mubr.msk.f32.vlgmr.msra.gmra.mrb[0].mxu1 %vm598_vm8, %v555_v40 }
  0xc6   : > { %1139 = vmatprep.mubr.f32.mxu1 %v1361_v4 }
  0xd0   : > { %v596_v47 = vpop.permute.xlu0 %595 }
 0x194   : > { %v668_v48 = vpop.f32.mrb[0].mxu0 }
 0x195   : > { %v669_v53 = vadd.f32 %v668_v48, %v596_v47  ;;  %v670_v58 = vpop.f32.mrb[1].mxu0 }
 0x196   : > { %v671_v4 = vadd.f32 %v670_v58, %v596_v47 }
 0x197   : > { %v1635_v59 = vmax.f32 %v669_v53, 0.0 }
 0x198   : > { %v739_v60 = vpop.f32.mrb[0].mxu1  ;;  %v1655_v5 = vmax.f32 %v671_v4, 0.0 }
 0x199   : > { %v740_v61 = vadd.f32 %v739_v60, %v596_v47  ;;  %v741_v62 = vpop.f32.mrb[1].mxu1  ;;  %804 = vrot.lane.b32.xlu0 %v1635_v59, %s1358_s8  ;;  %753 = vrot.lane.b32.xlu1 %v1635_v59, %s1355_s29 }
 0x19a   : > { %v742_v6 = vadd.f32 %v741_v62, %v596_v47 }
 0x19b   : > { %v1641_v63 = vmax.f32 %v740_v61, 0.0 }
 0x19c   : > { %v1661_v7 = vmax.f32 %v742_v6, 0.0 }
 0x19d   : > { %912 = vrot.lane.b32.xlu0 %v1641_v63, %s1358_s8  ;;  %766 = vrot.lane.b32.xlu1 %v1635_v59, %s1354_s28 }
 0x1a1   : > { %817 = vrot.lane.b32.xlu0 %v1635_v59, %s1359_s9  ;;  %861 = vrot.lane.b32.xlu1 %v1641_v63, %s1355_s29 }
 0x1a5   : > { %830 = vrot.lane.b32.xlu0 %v1635_v59, %s1360_s10  ;;  %874 = vrot.lane.b32.xlu1 %v1641_v63, %s1354_s28 }
 0x1a9   : > { %763 = vrot.lane.b32.xlu0 %v1655_v5, %s1354_s28  ;;  %779 = vrot.lane.b32.xlu1 %v1635_v59, %s1356_s30 }
 0x1ad   : > { %857 = vrot.lane.b32.xlu0 %v1661_v7, %s1355_s29  ;;  %792 = vrot.lane.b32.xlu1 %v1635_v59, %s1357_s7 }
 0x1b1   : > { %871 = vrot.lane.b32.xlu0 %v1661_v7, %s1354_s28  ;;  %887 = vrot.lane.b32.xlu1 %v1641_v63, %s1356_s30 }
 0x1b5   : > { %776 = vrot.lane.b32.xlu0 %v1655_v5, %s1356_s30  ;;  %900 = vrot.lane.b32.xlu1 %v1641_v63, %s1357_s7 }
 0x1b9   : > { %789 = vrot.lane.b32.xlu0 %v1655_v5, %s1357_s7  ;;  %749 = vrot.lane.b32.xlu1 %v1655_v5, %s1355_s29  ;;  %s258_s29 = scalar_lea.vmem %s1813_s6, %s1260_s24 }
 0x1bd   : > { %884 = vrot.lane.b32.xlu0 %v1661_v7, %s1356_s30  ;;  %806 = vrot.lane.b32.xlu1 %v1655_v5, %s1358_s8 }
 0x1c1   : > { %897 = vrot.lane.b32.xlu0 %v1661_v7, %s1357_s7  ;;  %914 = vrot.lane.b32.xlu1 %v1661_v7, %s1358_s8 }
 0x1c5   : > { %925 = vrot.lane.b32.xlu0 %v1641_v63, %s1359_s9  ;;  %819 = vrot.lane.b32.xlu1 %v1655_v5, %s1359_s9 }
 0x1c9   : > { %938 = vrot.lane.b32.xlu0 %v1641_v63, %s1360_s10  ;;  %832 = vrot.lane.b32.xlu1 %v1655_v5, %s1360_s10 }
 0x1cd   : > { %843 = vrot.lane.b32.xlu0 %v1635_v59, %s1363_s11  ;;  %927 = vrot.lane.b32.xlu1 %v1661_v7, %s1359_s9 }
 0x1d1   : > { %951 = vrot.lane.b32.xlu0 %v1641_v63, %s1363_s11  ;;  %940 = vrot.lane.b32.xlu1 %v1661_v7, %s1360_s10 }
 0x1d5   : > { %1149 = vperm.xlu0 %1344, %v1146_v9   ;;  %845 = vrot.lane.b32.xlu1 %v1655_v5, %s1363_s11 }
 0x1d9   : > { %953 = vrot.lane.b32.xlu1 %v1661_v7, %s1363_s11 }
 0x1dd   : > { %1165 = vperm.xlu1 %1345, %v1146_v9  }
 0x20b   : > { %v805_v10 = vpop.permute.xlu0 %804  ;;  %v754_v13 = vpop.permute.xlu1 %753 }
 0x20f   : > { %v1710_v14 = vpop.permute.xlu0 %912  ;;  %v767_v19 = vpop.permute.xlu1 %766 }
 0x213   : > { %v1712_v20 = vpop.permute.xlu0 %817  ;;  %v862_v21 = vpop.permute.xlu1 %861 }
 0x217   : > { %v1714_v24 = vpop.permute.xlu0 %830  ;;  %v875_v25 = vpop.permute.xlu1 %874 }
 0x21b   : > { %v764_v26 = vpop.permute.xlu0 %763  ;;  %v780_v27 = vpop.permute.xlu1 %779 }
 0x21c   : > { %v771_v43 = vsel %vm293_vm0, %v764_v26, %v767_v19  ;;  %v768_v44 = vsel %vm293_vm0, %v767_v19, %v764_v26 }
 0x21d   : > { %v772_v45 = vmul.f32 %v771_v43, %v1507_v15  ;;  %v773_v62 = vmul.f32 %v768_v44, %v1516_v18 }
 0x21f   : > { %v858_v28 = vpop.permute.xlu0 %857  ;;  %v793_v8 = vpop.permute.xlu1 %792 }
 0x220   : > { %v863_v31 = vsel %vm271_vm1, %v862_v21, %v858_v28  ;;  %v866_v32 = vsel %vm271_vm1, %v858_v28, %v862_v21 }
 0x221   : > { %v867_v37 = vmul.f32 %v866_v32, %v1510_v16  ;;  %v868_v38 = vmul.f32 %v863_v31, %v1513_v17 }
 0x223   : > { %v872_v33 = vpop.permute.xlu0 %871  ;;  %v888_v34 = vpop.permute.xlu1 %887 }
 0x224   : > { %v876_v35 = vsel %vm293_vm0, %v875_v25, %v872_v33  ;;  %v879_v36 = vsel %vm293_vm0, %v872_v33, %v875_v25 }
 0x225   : > { %v880_v11 = vmul.f32 %v879_v36, %v1507_v15  ;;  %v881_v39 = vmul.f32 %v876_v35, %v1516_v18 }
 0x227   : > { %v1312_v12 = vpack.c.bf16 %v880_v11, %v867_v37  ;;  %v777_v40 = vpop.permute.xlu0 %776  ;;  %v901_v41 = vpop.permute.xlu1 %900  ;;  %v1310_v42 = vpack.c.bf16 %v881_v39, %v868_v38 }
 0x228   : > { %v781_v46 = vsel %vm315_vm2, %v780_v27, %v777_v40  ;;  %v784_v9 = vsel %vm315_vm2, %v777_v40, %v780_v27 }
 0x229   : > { %1311 = vmatprep.subr.bf16.mxu1 %v1310_v42  ;;  %v786_v19 = vmul.f32 %v781_v46, %v1540_v50 }
 0x22a   : > { %1313 = vmatpush1.bf16.msra.mxu1 %v1312_v12 }
 0x22b   : > { %v790_v47 = vpop.permute.xlu0 %789  ;;  %v750_v48 = vpop.permute.xlu1 %749 }
 0x22c   : > { %v794_v53 = vsel %vm337_vm3, %v793_v8, %v790_v47  ;;  %v797_v58 = vsel %vm337_vm3, %v790_v47, %v793_v8  ;;  %v755_v60 = vsel %vm271_vm1, %v754_v13, %v750_v48  ;;  %v758_v61 = vsel %vm271_vm1, %v750_v48, %v754_v13 }
 0x22d   : > { %v799_v4 = vmul.f32 %v794_v53, %v1546_v52  ;;  %v759_v6 = vmul.f32 %v758_v61, %v1510_v16  ;;  %v760_v15 = vmul.f32 %v755_v60, %v1513_v17  ;;  %v798_v21 = vmul.f32 %v797_v58, %v1543_v51 }
 0x22e   : > { %v785_v17 = vmul.f32 %v784_v9, %v1537_v49 }
 0x22f   : > { %v1296_v25 = vpack.c.bf16 %v772_v45, %v759_v6  ;;  %v885_v26 = vpop.permute.xlu0 %884  ;;  %v807_v28 = vpop.permute.xlu1 %806  ;;  %v1294_v8 = vpack.c.bf16 %v773_v62, %v760_v15  ;;  %v1298_v32 = vpack.c.bf16 %v799_v4, %v786_v19 }
 0x230   : > { %v889_v13 = vsel %vm315_vm2, %v888_v34, %v885_v26  ;;  %v892_v18 = vsel %vm315_vm2, %v885_v26, %v888_v34  ;;  %v808_v31 = vsel %vm360_vm4, %v805_v10, %v807_v28  ;;  %v812_v16 = vsel %vm360_vm4, %v807_v28, %v805_v10 }
 0x231   : > { %v814_v27 = vmul.f32 %v812_v16, %v1565_v23  ;;  %1295 = vmatprep.subr.bf16.mxu0 %v1294_v8  ;;  %v1300_v33 = vpack.c.bf16 %v798_v21, %v785_v17  ;;  %v893_v35 = vmul.f32 %v892_v18, %v1537_v49  ;;  %v894_v36 = vmul.f32 %v889_v13, %v1540_v50 }
 0x232   : > { %1297 = vmatpush1.bf16.msra.mxu0 %v1296_v25  ;;  %v813_v37 = vmul.f32 %v808_v31, %v1562_v22 }
 0x233   : > { %v898_v38 = vpop.permute.xlu0 %897  ;;  %1299 = vmatprep.subr.bf16.mxu0 %v1298_v32  ;;  %v915_v34 = vpop.permute.xlu1 %914  ;;  %v1302_v12 = vpack.c.bf16 %v814_v27, %v1655_v5 }
 0x234   : > { %v902_v11 = vsel %vm337_vm3, %v901_v41, %v898_v38  ;;  %v905_v10 = vsel %vm337_vm3, %v898_v38, %v901_v41  ;;  %v920_v39 = vsel %vm360_vm4, %v915_v34, %v1710_v14  ;;  %v916_v50 = vsel %vm360_vm4, %v1710_v14, %v915_v34 }
 0x235   : > { %v906_v40 = vmul.f32 %v905_v10, %v1543_v51  ;;  %v907_v49 = vmul.f32 %v902_v11, %v1546_v52  ;;  %v922_v42 = vmul.f32 %v920_v39, %v1565_v23  ;;  %v1304_v41 = vpack.c.bf16 %v813_v37, %v1635_v59 }
 0x236   : > { %1301 = vmatpush1.bf16.msra.mxu0 %v1300_v33  ;;  %v921_v46 = vmul.f32 %v916_v50, %v1562_v22 }
 0x237   : > { %v1316_v43 = vpack.c.bf16 %v906_v40, %v893_v35  ;;  %1303 = vmatprep.subr.bf16.mxu0 %v1302_v12  ;;  %v820_v44 = vpop.permute.xlu1 %819  ;;  %v1314_v45 = vpack.c.bf16 %v907_v49, %v894_v36  ;;  %v926_v47 = vpop.permute.xlu0 %925  ;;  %v1318_v51 = vpack.c.bf16 %v922_v42, %v1661_v7 }
 0x238   : > { %v821_v52 = vsel %vm382_vm5, %v1712_v20, %v820_v44  ;;  %v825_v5 = vsel %vm382_vm5, %v820_v44, %v1712_v20  ;;  %v1320_v14 = vpack.c.bf16 %v921_v46, %v1641_v63 }
 0x239   : > { %1315 = vmatprep.subr.bf16.mxu1 %v1314_v45  ;;  %v826_v7 = vmul.f32 %v821_v52, %v1586_v54  ;;  %v827_v48 = vmul.f32 %v825_v5, %v1589_v55 }
 0x23a   : > { %1305 = vmatpush1.bf16.msra.mxu0 %v1304_v41  ;;  %1317 = vmatpush1.bf16.msra.mxu1 %v1316_v43 }
 0x23b   : > { %1319 = vmatprep.subr.bf16.mxu1 %v1318_v51  ;;  %v833_v23 = vpop.permute.xlu1 %832  ;;  %v939_v58 = vpop.permute.xlu0 %938 }
 0x23c   : > { %v834_v59 = vsel %vm404_vm6, %v1714_v24, %v833_v23  ;;  %v838_v22 = vsel %vm404_vm6, %v833_v23, %v1714_v24 }
 0x23d   : > { %v839_v53 = vmul.f32 %v834_v59, %v1592_v56  ;;  %v840_v20 = vmul.f32 %v838_v22, %v1595_v57 }
 0x23e   : > { %1321 = vmatpush1.bf16.msra.mxu1 %v1320_v14 }
 0x23f   : > { %v1308_v60 = vpack.c.bf16 %v839_v53, %v826_v7  ;;  %v928_v61 = vpop.permute.xlu1 %927  ;;  %v1306_v62 = vpack.c.bf16 %v840_v20, %v827_v48  ;;  %v844_v9 = vpop.permute.xlu0 %843 }
 0x240   : > { %v929_v63 = vsel %vm382_vm5, %v926_v47, %v928_v61  ;;  %v933_v4 = vsel %vm382_vm5, %v928_v61, %v926_v47 }
 0x241   : > { %1307 = vmatprep.subr.bf16.mxu0 %v1306_v62  ;;  %v934_v19 = vmul.f32 %v929_v63, %v1586_v54  ;;  %v935_v21 = vmul.f32 %v933_v4, %v1589_v55  ;;  %v964_v54 = vld [vmem:[%s1810_s3] sm:$0xff] }
 0x242   : > { %1309 = vmatpush1.bf16.msra.mxu0 %v1308_v60 }
 0x243   : > { %v941_v24 = vpop.permute.xlu1 %940  ;;  %v952_v55 = vpop.permute.xlu0 %951 }
 0x244   : > { %v942_v6 = vsel %vm404_vm6, %v939_v58, %v941_v24  ;;  %v946_v15 = vsel %vm404_vm6, %v941_v24, %v939_v58 }
 0x245   : > { %v947_v25 = vmul.f32 %v942_v6, %v1592_v56  ;;  %v948_v26 = vmul.f32 %v946_v15, %v1595_v57 }
 0x247   : > { %v1324_v28 = vpack.c.bf16 %v947_v25, %v934_v19  ;;  %v846_v8 = vpop.permute.xlu1 %845  ;;  %v1322_v13 = vpack.c.bf16 %v948_v26, %v935_v21 }
 0x248   : > { %v847_v18 = vsel %vm426_vm7, %v844_v9, %v846_v8  ;;  %v851_v31 = vsel %vm426_vm7, %v846_v8, %v844_v9 }
 0x249   : > { %v852_v16 = vmul.f32 %v847_v18, %v1611_v29  ;;  %v853_v17 = vmul.f32 %v851_v31, %v1614_v30  ;;  %1323 = vmatprep.subr.bf16.mxu1 %v1322_v13 }
 0x24a   : > { %1325 = vmatpush1.bf16.msra.mxu1 %v1324_v28 }
 0x24b   : > { %1020 = vmatprep.subr.mxu0 %v853_v17  ;;  %v954_v56 = vpop.permute.xlu1 %953 }
 0x24c   : > { %v955_v57 = vsel %vm426_vm7, %v952_v55, %v954_v56  ;;  %v959_v27 = vsel %vm426_vm7, %v954_v56, %v952_v55  ;;  %1021 = vmatpush1.msra.mxu0 %v852_v16 }
 0x24d   : > { %v960_v32 = vmul.f32 %v955_v57, %v1611_v29  ;;  %v961_v33 = vmul.f32 %v959_v27, %v1614_v30  ;;  %1252 = vmatmul.mubr.msk.f32.vlgmr.msra.gmra.mrb[2].mxu0 %vm598_vm8, %v964_v54 }
 0x24f   : > { %1091 = vmatprep.subr.mxu1 %v961_v33 }
 0x250   : > { %1092 = vmatpush1.msra.mxu1 %v960_v32 }
 0x251   : > { %1253 = vmatmul.mubr.msk.f32.vlgmr.msra.gmra.mrb[2].mxu1 %vm598_vm8, %v964_v54 }
 0x254   : > { %v1150_v35 = vpop.permute.xlu0 %1149 }
 0x25c   : > { %v1166_v11 = vpop.permute.xlu1 %1165 }
 0x320   : > { %v1070_v36 = vpop.f32.mrb[2].mxu0 }
 0x321   : > { %v1152_v37 = vadd.f32 %v1150_v35, %v1070_v36  ;;  %v1072_v38 = vpop.f32.mrb[3].mxu0 }
 0x322   : > { %v1153_v34 = vadd.f32 %v1150_v35, %v1072_v38 }
 0x323   : > { %v1156_v10 = vadd.f32 %v1152_v37, %v1421_v1 }
 0x324   : > { %v1157_v29 = vadd.f32 %v1153_v34, %v1415_v0  ;;  %v1141_v30 = vpop.f32.mrb[2].mxu1 }
 0x325   : > { %v1158_v39 = vmax.f32 %v1156_v10, 0.0  ;;  %v1168_v12 = vadd.f32 %v1166_v11, %v1141_v30  ;;  %v1143_v40 = vpop.f32.mrb[3].mxu1 }
 0x326   : > { %v1159_v49 = vmax.f32 %v1157_v29, 0.0  ;;  %v1169_v50 = vadd.f32 %v1166_v11, %v1143_v40 }
 0x327   : > { %1160 = vst [vmem:[%s258_s29] sm:$0xff] %v1158_v39  ;;  %v1172_v42 = vadd.f32 %v1427_v2, %v1168_v12 }
 0x328   : > { %1161 = vst [vmem:[%s258_s29 + $0x8] sm:$0xff] %v1159_v49  ;;  %v1173_v43 = vadd.f32 %v1429_v3, %v1169_v50 }
 0x329   : > { %v1174_v1 = vmax.f32 %v1172_v42, 0.0 }
 0x32a   : > { %v1175_v44 = vmax.f32 %v1173_v43, 0.0 }
 0x32b   : > { %1256 = vst [vmem:[%s258_s29 + $0x10] sm:$0xff] %v1174_v1 }
 0x32c   : > { %1257 = vst [vmem:[%s258_s29 + $0x18] sm:$0xff] %v1175_v44 }
 0x32d PF: > { %s16_s21 = sadd.s32 1, %s1352_s21  }
 0x32e   : > { %p13_p4 = scmp.ge.s32.totalorder %s16_s21, 4  }
 0x330   :  { %15 = sbr.rel (!%p13_p4) target bundleno = 1 (0x1), region = 76 }

</bundles_post_ra>
